<compile_context>
chip_gen: v6e
topology: v6e:2x2x1
jax: 0.10.0
libtpu: 0.0.40
codegen_flags: <defaults>
</compile_context>

<pallas_src>
import jax
import jax.numpy as jnp
import numpy as np
from jax.experimental import pallas as pl
from jax.experimental.pallas import tpu as pltpu

EPS = 0.01
KSIZE = 3
HALO = 8   # 8-row halo keeps every block / slice sublane-aligned (>= the 2 rows required)


def _make_guide_filter_kernel(w_rows, uniform_scale, tile_h, img_h, width):
    he = tile_h + 2 * HALO                           # extended band height

    def kernel(ic_ref, it_ref, ib_ref, pc_ref, pt_ref, pb_ref, q_ref):
        t = pl.program_id(1)
        num_t = pl.num_programs(1)

        i_cur = ic_ref[0]                            # (tile_h, W)
        p_cur = pc_ref[0]

        # Boundary tiles: replace the halo blocks with edge-replicated rows so the
        # vertical stencil sees exactly what ReplicationPad2d(I), pad(p) would supply.
        top_i = jnp.where(t == 0, jnp.broadcast_to(i_cur[0:1, :], (HALO, width)), it_ref[0])
        top_p = jnp.where(t == 0, jnp.broadcast_to(p_cur[0:1, :], (HALO, width)), pt_ref[0])
        bot_i = jnp.where(t == num_t - 1,
                          jnp.broadcast_to(i_cur[tile_h - 1:tile_h, :], (HALO, width)),
                          ib_ref[0])
        bot_p = jnp.where(t == num_t - 1,
                          jnp.broadcast_to(p_cur[tile_h - 1:tile_h, :], (HALO, width)),
                          pb_ref[0])

        ii = jnp.concatenate([top_i, i_cur, bot_i], axis=0)        # (he, W)
        pp = jnp.concatenate([top_p, p_cur, bot_p], axis=0)

        # Hoisted edge masks, reused by every shift (JAX does not CSE these per call).
        col = jax.lax.broadcasted_iota(jnp.int32, (he, width), 1)
        col_first = col == 0
        col_last = col == width - 1
        # Global row index of every extended-band row; ==0 / ==img_h-1 only for the tiles
        # that actually touch the image border (used by the stage-2 vertical clamp only).
        grow = jax.lax.broadcasted_iota(jnp.int32, (he, width), 0) + (t * tile_h - HALO)
        row_first = grow == 0
        row_last = grow == img_h - 1

        def hshift(x, s):
            # out[:, j] = x[:, clamp(j + s, 0, W-1)]   (lane roll on the XLU + one select)
            rolled = pltpu.roll(x, shift=(-s) % width, axis=1)
            return jnp.where(col_first if s < 0 else col_last, x, rolled)

        def vshift(x, s):
            # out[i, :] = x[i + s, :] with wraparound; the wrapped rows only ever feed the
            # halo rows that are sliced away before the store, so no edge select needed.
            return pltpu.roll(x, shift=(-s) % he, axis=0)

        def vshift_clamped(x, s):
            # Stage-2 variant: also replicate at the true image border so that box(a),
            # box(b) operate on ReplicationPad2d(a), pad(b) — matching the reference.
            rolled = pltpu.roll(x, shift=(-s) % he, axis=0)
            return jnp.where(row_first if s < 0 else row_last, x, rolled)

        def box_filter(h_quantities, vsh):
            # h_quantities: list of [hq_-1, hq_0, hq_+1] horizontally shifted slices.
            outs = []
            for hq in h_quantities:
                if uniform_scale is not None:
                    # Separable fast path for the module's constant 1/9 box: adds only,
                    # one scale at the end.
                    rsum = hq[0] + hq[1] + hq[2]
                    outs.append((vsh(rsum, -1) + rsum + vsh(rsum, 1)) * uniform_scale)
                else:
                    acc = None
                    for di in range(KSIZE):
                        w0, w1, w2 = w_rows[di]
                        r = w0 * hq[0] + w1 * hq[1] + w2 * hq[2]
                        if di != 1:
                            r = vsh(r, di - 1)
                        acc = r if acc is None else acc + r
                    outs.append(acc)
            return outs

        # ---- stage 1: box means of I, p, I*I, I*p (a, b stay in vregs/VMEM) ----------
        h_i = [hshift(ii, -1), ii, hshift(ii, 1)]
        h_p = [hshift(pp, -1), pp, hshift(pp, 1)]
        h_ii = [h_i[d] * h_i[d] for d in range(KSIZE)]   # shifted slices reused: 3 muls
        h_ip = [h_i[d] * h_p[d] for d in range(KSIZE)]
        mean_i, mean_p, mean_ii, mean_ip = box_filter([h_i, h_p, h_ii, h_ip], vshift)

        var_i = mean_ii - mean_i * mean_i                # keep stats path in f32
        cov_ip = mean_ip - mean_i * mean_p
        denom = var_i + EPS
        inv = pl.reciprocal(denom, approx=True)          # EUP slot instead of a VALU divide
        inv = inv * (2.0 - denom * inv)                  # one Newton step -> ~f32 accuracy
        a = cov_ip * inv
        b = mean_p - a * mean_i

        # ---- stage 2: q = box(a) * I + box(b); only the tile_h kept rows are stored ---
        h_a = [hshift(a, -1), a, hshift(a, 1)]
        h_b = [hshift(b, -1), b, hshift(b, 1)]
        mean_a, mean_b = box_filter([h_a, h_b], vshift_clamped)
        q_ref[0] = mean_a[HALO:HALO + tile_h] * i_cur + mean_b[HALO:HALO + tile_h]

    return kernel


def guide_filter(I, p, weight_m, *, tile_h=128):
    """I, p: (N, 1, H, W) float32; weight_m: (1, 1, 3, 3) float32. Returns (N, 1, H, W)."""
    n_img, c, img_h, img_w = I.shape
    assert c == 1, "guide_filter conv weight is [1,1,3,3] -> single channel"
    assert img_h % 8 == 0, "H must be a multiple of 8"        # TODO(synk): generic H via masks
    assert img_w % 128 == 0, "W must be a multiple of 128"    # TODO(synk): generic W via masks

    i2 = jnp.asarray(I, jnp.float32)[:, 0]                    # (N, H, W)
    p2 = jnp.asarray(p, jnp.float32)[:, 0]

    # weight_m is a fixed, non-trainable buffer in the module -> bake taps in at trace
    # time (no SMEM reads) and detect the uniform case for the separable fast path.
    w_np = np.asarray(weight_m, np.float32).reshape(KSIZE, KSIZE)
    if np.all(w_np == w_np.flat[0]):
        uniform_scale, w_rows = float(w_np.flat[0]), None
    else:
        uniform_scale = None
        w_rows = tuple(tuple(float(v) for v in row) for row in w_np)

    # Largest multiple-of-8 divisor of H that fits the requested band size.  Band VMEM
    # footprint ~ 20 * (tile_h + 16) * W * 4 B: the default 128 keeps 1080p-class images
    # comfortably inside v7x's 64 MiB VMEM; v5e/v6e can pass a larger tile_h.
    cap = max(8, min(tile_h, img_h))
    tile_h = max(th for th in range(8, cap + 1, 8) if img_h % th == 0)
    num_tiles = img_h // tile_h
    r8 = tile_h // 8                       # 8-row blocks per band
    hb8 = img_h // 8                       # 8-row blocks per image

    band_spec = pl.BlockSpec((1, tile_h, img_w), lambda ni, ti: (ni, ti, 0))
    top_spec = pl.BlockSpec((1, HALO, img_w),
                            lambda ni, ti: (ni, jnp.maximum(ti * r8 - 1, 0), 0))
    bot_spec = pl.BlockSpec((1, HALO, img_w),
                            lambda ni, ti: (ni, jnp.minimum((ti + 1) * r8, hb8 - 1), 0))

    kernel = _make_guide_filter_kernel(w_rows, uniform_scale, tile_h, img_h, img_w)

    q = pl.pallas_call(
        kernel,
        out_shape=jax.ShapeDtypeStruct((n_img, img_h, img_w), jnp.float32),
        grid=(n_img, num_tiles),
        in_specs=[band_spec, top_spec, bot_spec, band_spec, top_spec, bot_spec],
        out_specs=band_spec,
        compiler_params=pltpu.CompilerParams(
            dimension_semantics=("parallel", "parallel"),
            vmem_limit_bytes=64 * 1024 * 1024),
    )(i2, i2, i2, p2, p2, p2)

    return q[:, None, :, :]                                   # back to NCHW


def _reference_guide_filter(I, p, weight_m):
    """Pure-JAX reference mirroring the PyTorch forward."""
    def box(x):
        xp = jnp.pad(x, ((0, 0), (0, 0), (1, 1), (1, 1)), mode="edge")
        return jax.lax.conv_general_dilated(
            xp, weight_m, window_strides=(1, 1), padding="VALID",
            dimension_numbers=("NCHW", "OIHW", "NCHW"))

    mean_I = box(I)
    mean_p = box(p)
    mean_II = box(I * I)
    mean_Ip = box(I * p)
    var_I = mean_II - mean_I * mean_I
    cov_Ip = mean_Ip - mean_I * mean_p
    a = cov_Ip / (var_I + EPS)
    b = mean_p - a * mean_I
    mean_a = box(a)
    mean_b = box(b)
    return mean_a * I + mean_b


if __name__ == "__main__":
    key = jax.random.PRNGKey(0)
    k1, k2, k3 = jax.random.split(key, 3)
    N, C, H, W = 2, 1, 64, 128         # W multiple of 128 -> lane-dense, unmasked stores
    I = jax.random.uniform(k1, (N, C, H, W), dtype=jnp.float32)
    p = jax.random.uniform(k2, (N, C, H, W), dtype=jnp.float32)

    # (1) Module default: fixed non-trainable 1/9 box, multi-tile path (T = 4 bands).
    weight_uniform = jnp.full((1, 1, KSIZE, KSIZE), 1.0 / 9.0, dtype=jnp.float32)
    q = jax.block_until_ready(guide_filter(I, p, weight_uniform, tile_h=16))
    q_ref = _reference_guide_filter(I, p, weight_uniform)
    np.testing.assert_allclose(np.asarray(q), np.asarray(q_ref), rtol=1e-4, atol=1e-4)

    # (2) Same weights, single-band path (T = 1, whole image).
    q1 = jax.block_until_ready(guide_filter(I, p, weight_uniform, tile_h=H))
    np.testing.assert_allclose(np.asarray(q1), np.asarray(q_ref), rtol=1e-4, atol=1e-4)

    # (3) Asymmetric weights: guards the w[di][dj] tap mapping on the general path.
    weight_asym = jax.random.uniform(k3, (1, 1, KSIZE, KSIZE), dtype=jnp.float32)
    qa = jax.block_until_ready(guide_filter(I, p, weight_asym, tile_h=16))
    qa_ref = _reference_guide_filter(I, p, weight_asym)
    np.testing.assert_allclose(np.asarray(qa), np.asarray(qa_ref), rtol=1e-4, atol=1e-4)

    print("KERNEL_OK")
</pallas_src>

<mosaic_0001>
module attributes {stable_mosaic.version = 11 : i64} {
  func.func @kernel(%arg0: i32, %arg1: i32, %arg2: memref<1x16x128xf32, #tpu.memory_space<vmem>>, %arg3: memref<1x8x128xf32, #tpu.memory_space<vmem>>, %arg4: memref<1x8x128xf32, #tpu.memory_space<vmem>>, %arg5: memref<1x16x128xf32, #tpu.memory_space<vmem>>, %arg6: memref<1x8x128xf32, #tpu.memory_space<vmem>>, %arg7: memref<1x8x128xf32, #tpu.memory_space<vmem>>, %arg8: memref<1x16x128xf32, #tpu.memory_space<vmem>>) attributes {dimension_semantics = [#tpu.dimension_semantics<parallel>, #tpu.dimension_semantics<parallel>], iteration_bounds = array<i64: 2, 4>, scalar_prefetch = 0 : i64, scratch_operands = 0 : i64, tpu.core_type = #tpu.core_type<tc>, window_params = [{transform_indices = @transform_0, window_bounds = array<i64: 1, 16, 128>}, {transform_indices = @transform_1, window_bounds = array<i64: 1, 8, 128>}, {transform_indices = @transform_2, window_bounds = array<i64: 1, 8, 128>}, {transform_indices = @transform_3, window_bounds = array<i64: 1, 16, 128>}, {transform_indices = @transform_4, window_bounds = array<i64: 1, 8, 128>}, {transform_indices = @transform_5, window_bounds = array<i64: 1, 8, 128>}, {transform_indices = @transform_6, window_bounds = array<i64: 1, 16, 128>}]} {
    %c0 = arith.constant 0 : index
    %c0_0 = arith.constant 0 : index
    %c0_1 = arith.constant 0 : index
    %0 = vector.load %arg2[%c0, %c0_0, %c0_1] : memref<1x16x128xf32, #tpu.memory_space<vmem>>, vector<1x16x128xf32>
    %1 = vector.shape_cast %0 : vector<1x16x128xf32> to vector<16x128xf32>
    %c0_2 = arith.constant 0 : index
    %c0_3 = arith.constant 0 : index
    %c0_4 = arith.constant 0 : index
    %2 = vector.load %arg5[%c0_2, %c0_3, %c0_4] : memref<1x16x128xf32, #tpu.memory_space<vmem>>, vector<1x16x128xf32>
    %3 = vector.shape_cast %2 : vector<1x16x128xf32> to vector<16x128xf32>
    %c0_i32 = arith.constant 0 : i32
    %4 = arith.cmpi eq, %arg1, %c0_i32 : i32
    %5 = vector.extract_strided_slice %1 {offsets = [0, 0], sizes = [1, 128], strides = [1, 1]} : vector<16x128xf32> to vector<1x128xf32>
    %6 = vector.shape_cast %5 : vector<1x128xf32> to vector<1x128xf32>
    %7 = vector.broadcast %6 : vector<1x128xf32> to vector<8x128xf32>
    %c0_5 = arith.constant 0 : index
    %c0_6 = arith.constant 0 : index
    %c0_7 = arith.constant 0 : index
    %8 = vector.load %arg3[%c0_5, %c0_6, %c0_7] : memref<1x8x128xf32, #tpu.memory_space<vmem>>, vector<1x8x128xf32>
    %9 = vector.shape_cast %8 : vector<1x8x128xf32> to vector<8x128xf32>
    %10 = arith.select %4, %7, %9 : vector<8x128xf32>
    %c0_i32_8 = arith.constant 0 : i32
    %11 = arith.cmpi eq, %arg1, %c0_i32_8 : i32
    %12 = vector.extract_strided_slice %3 {offsets = [0, 0], sizes = [1, 128], strides = [1, 1]} : vector<16x128xf32> to vector<1x128xf32>
    %13 = vector.shape_cast %12 : vector<1x128xf32> to vector<1x128xf32>
    %14 = vector.broadcast %13 : vector<1x128xf32> to vector<8x128xf32>
    %c0_9 = arith.constant 0 : index
    %c0_10 = arith.constant 0 : index
    %c0_11 = arith.constant 0 : index
    %15 = vector.load %arg6[%c0_9, %c0_10, %c0_11] : memref<1x8x128xf32, #tpu.memory_space<vmem>>, vector<1x8x128xf32>
    %16 = vector.shape_cast %15 : vector<1x8x128xf32> to vector<8x128xf32>
    %17 = arith.select %11, %14, %16 : vector<8x128xf32>
    %c3_i32 = arith.constant 3 : i32
    %18 = arith.cmpi eq, %arg1, %c3_i32 : i32
    %19 = vector.extract_strided_slice %1 {offsets = [15, 0], sizes = [1, 128], strides = [1, 1]} : vector<16x128xf32> to vector<1x128xf32>
    %20 = vector.shape_cast %19 : vector<1x128xf32> to vector<1x128xf32>
    %21 = vector.broadcast %20 : vector<1x128xf32> to vector<8x128xf32>
    %c0_12 = arith.constant 0 : index
    %c0_13 = arith.constant 0 : index
    %c0_14 = arith.constant 0 : index
    %22 = vector.load %arg4[%c0_12, %c0_13, %c0_14] : memref<1x8x128xf32, #tpu.memory_space<vmem>>, vector<1x8x128xf32>
    %23 = vector.shape_cast %22 : vector<1x8x128xf32> to vector<8x128xf32>
    %24 = arith.select %18, %21, %23 : vector<8x128xf32>
    %c3_i32_15 = arith.constant 3 : i32
    %25 = arith.cmpi eq, %arg1, %c3_i32_15 : i32
    %26 = vector.extract_strided_slice %3 {offsets = [15, 0], sizes = [1, 128], strides = [1, 1]} : vector<16x128xf32> to vector<1x128xf32>
    %27 = vector.shape_cast %26 : vector<1x128xf32> to vector<1x128xf32>
    %28 = vector.broadcast %27 : vector<1x128xf32> to vector<8x128xf32>
    %c0_16 = arith.constant 0 : index
    %c0_17 = arith.constant 0 : index
    %c0_18 = arith.constant 0 : index
    %29 = vector.load %arg7[%c0_16, %c0_17, %c0_18] : memref<1x8x128xf32, #tpu.memory_space<vmem>>, vector<1x8x128xf32>
    %30 = vector.shape_cast %29 : vector<1x8x128xf32> to vector<8x128xf32>
    %31 = arith.select %25, %28, %30 : vector<8x128xf32>
    %32 = tpu.concatenate %10, %1, %24 in 0 : vector<8x128xf32>, vector<16x128xf32>, vector<8x128xf32> -> vector<32x128xf32>
    %33 = tpu.concatenate %17, %3, %31 in 0 : vector<8x128xf32>, vector<16x128xf32>, vector<8x128xf32> -> vector<32x128xf32>
    %34 = tpu.iota {dimensions = array<i32: 1>} : vector<32x128xi32>
    %c0_i32_19 = arith.constant 0 : i32
    %35 = vector.broadcast %c0_i32_19 : i32 to vector<32x128xi32>
    %36 = arith.cmpi eq, %34, %35 : vector<32x128xi32>
    %c127_i32 = arith.constant 127 : i32
    %37 = vector.broadcast %c127_i32 : i32 to vector<32x128xi32>
    %38 = arith.cmpi eq, %34, %37 : vector<32x128xi32>
    %39 = tpu.iota {dimensions = array<i32: 0>} : vector<32x128xi32>
    %c16_i32 = arith.constant 16 : i32
    %40 = arith.muli %arg1, %c16_i32 : i32
    %c8_i32 = arith.constant 8 : i32
    %41 = arith.subi %40, %c8_i32 : i32
    %42 = vector.broadcast %41 : i32 to vector<32x128xi32>
    %43 = arith.addi %39, %42 : vector<32x128xi32>
    %c0_i32_20 = arith.constant 0 : i32
    %44 = vector.broadcast %c0_i32_20 : i32 to vector<32x128xi32>
    %45 = arith.cmpi eq, %43, %44 : vector<32x128xi32>
    %c63_i32 = arith.constant 63 : i32
    %46 = vector.broadcast %c63_i32 : i32 to vector<32x128xi32>
    %47 = arith.cmpi eq, %43, %46 : vector<32x128xi32>
    %c1_i32 = arith.constant 1 : i32
    %48 = tpu.dynamic_rotate %32 by %c1_i32 dim 1 : vector<32x128xf32>, i32 -> vector<32x128xf32>
    %49 = arith.select %36, %32, %48 : vector<32x128xi1>, vector<32x128xf32>
    %c127_i32_21 = arith.constant 127 : i32
    %50 = tpu.dynamic_rotate %32 by %c127_i32_21 dim 1 : vector<32x128xf32>, i32 -> vector<32x128xf32>
    %51 = arith.select %38, %32, %50 : vector<32x128xi1>, vector<32x128xf32>
    %c1_i32_22 = arith.constant 1 : i32
    %52 = tpu.dynamic_rotate %33 by %c1_i32_22 dim 1 : vector<32x128xf32>, i32 -> vector<32x128xf32>
    %53 = arith.select %36, %33, %52 : vector<32x128xi1>, vector<32x128xf32>
    %c127_i32_23 = arith.constant 127 : i32
    %54 = tpu.dynamic_rotate %33 by %c127_i32_23 dim 1 : vector<32x128xf32>, i32 -> vector<32x128xf32>
    %55 = arith.select %38, %33, %54 : vector<32x128xi1>, vector<32x128xf32>
    %56 = arith.mulf %49, %49 : vector<32x128xf32>
    %57 = arith.mulf %32, %32 : vector<32x128xf32>
    %58 = arith.mulf %51, %51 : vector<32x128xf32>
    %59 = arith.mulf %49, %53 : vector<32x128xf32>
    %60 = arith.mulf %32, %33 : vector<32x128xf32>
    %61 = arith.mulf %51, %55 : vector<32x128xf32>
    %62 = arith.addf %49, %32 : vector<32x128xf32>
    %63 = arith.addf %62, %51 : vector<32x128xf32>
    %c1_i32_24 = arith.constant 1 : i32
    %64 = tpu.dynamic_rotate %63 by %c1_i32_24 dim 0 : vector<32x128xf32>, i32 -> vector<32x128xf32>
    %65 = arith.addf %64, %63 : vector<32x128xf32>
    %c31_i32 = arith.constant 31 : i32
    %66 = tpu.dynamic_rotate %63 by %c31_i32 dim 0 : vector<32x128xf32>, i32 -> vector<32x128xf32>
    %67 = arith.addf %65, %66 : vector<32x128xf32>
    %cst = arith.constant 0.111111112 : f32
    %68 = vector.broadcast %cst : f32 to vector<32x128xf32>
    %69 = arith.mulf %67, %68 : vector<32x128xf32>
    %70 = arith.addf %53, %33 : vector<32x128xf32>
    %71 = arith.addf %70, %55 : vector<32x128xf32>
    %c1_i32_25 = arith.constant 1 : i32
    %72 = tpu.dynamic_rotate %71 by %c1_i32_25 dim 0 : vector<32x128xf32>, i32 -> vector<32x128xf32>
    %73 = arith.addf %72, %71 : vector<32x128xf32>
    %c31_i32_26 = arith.constant 31 : i32
    %74 = tpu.dynamic_rotate %71 by %c31_i32_26 dim 0 : vector<32x128xf32>, i32 -> vector<32x128xf32>
    %75 = arith.addf %73, %74 : vector<32x128xf32>
    %cst_27 = arith.constant 0.111111112 : f32
    %76 = vector.broadcast %cst_27 : f32 to vector<32x128xf32>
    %77 = arith.mulf %75, %76 : vector<32x128xf32>
    %78 = arith.addf %56, %57 : vector<32x128xf32>
    %79 = arith.addf %78, %58 : vector<32x128xf32>
    %c1_i32_28 = arith.constant 1 : i32
    %80 = tpu.dynamic_rotate %79 by %c1_i32_28 dim 0 : vector<32x128xf32>, i32 -> vector<32x128xf32>
    %81 = arith.addf %80, %79 : vector<32x128xf32>
    %c31_i32_29 = arith.constant 31 : i32
    %82 = tpu.dynamic_rotate %79 by %c31_i32_29 dim 0 : vector<32x128xf32>, i32 -> vector<32x128xf32>
    %83 = arith.addf %81, %82 : vector<32x128xf32>
    %cst_30 = arith.constant 0.111111112 : f32
    %84 = vector.broadcast %cst_30 : f32 to vector<32x128xf32>
    %85 = arith.mulf %83, %84 : vector<32x128xf32>
    %86 = arith.addf %59, %60 : vector<32x128xf32>
    %87 = arith.addf %86, %61 : vector<32x128xf32>
    %c1_i32_31 = arith.constant 1 : i32
    %88 = tpu.dynamic_rotate %87 by %c1_i32_31 dim 0 : vector<32x128xf32>, i32 -> vector<32x128xf32>
    %89 = arith.addf %88, %87 : vector<32x128xf32>
    %c31_i32_32 = arith.constant 31 : i32
    %90 = tpu.dynamic_rotate %87 by %c31_i32_32 dim 0 : vector<32x128xf32>, i32 -> vector<32x128xf32>
    %91 = arith.addf %89, %90 : vector<32x128xf32>
    %cst_33 = arith.constant 0.111111112 : f32
    %92 = vector.broadcast %cst_33 : f32 to vector<32x128xf32>
    %93 = arith.mulf %91, %92 : vector<32x128xf32>
    %94 = arith.mulf %69, %69 : vector<32x128xf32>
    %95 = arith.subf %85, %94 : vector<32x128xf32>
    %96 = arith.mulf %69, %77 : vector<32x128xf32>
    %97 = arith.subf %93, %96 : vector<32x128xf32>
    %cst_34 = arith.constant 0.00999999977 : f32
    %98 = vector.broadcast %cst_34 : f32 to vector<32x128xf32>
    %99 = arith.addf %95, %98 : vector<32x128xf32>
    %100 = tpu.reciprocal %99 {approx = true} : vector<32x128xf32> -> vector<32x128xf32>
    %101 = arith.mulf %99, %100 : vector<32x128xf32>
    %cst_35 = arith.constant 2.000000e+00 : f32
    %102 = vector.broadcast %cst_35 : f32 to vector<32x128xf32>
    %103 = arith.subf %102, %101 : vector<32x128xf32>
    %104 = arith.mulf %100, %103 : vector<32x128xf32>
    %105 = arith.mulf %97, %104 : vector<32x128xf32>
    %106 = arith.mulf %105, %69 : vector<32x128xf32>
    %107 = arith.subf %77, %106 : vector<32x128xf32>
    %c1_i32_36 = arith.constant 1 : i32
    %108 = tpu.dynamic_rotate %105 by %c1_i32_36 dim 1 : vector<32x128xf32>, i32 -> vector<32x128xf32>
    %109 = arith.select %36, %105, %108 : vector<32x128xi1>, vector<32x128xf32>
    %c127_i32_37 = arith.constant 127 : i32
    %110 = tpu.dynamic_rotate %105 by %c127_i32_37 dim 1 : vector<32x128xf32>, i32 -> vector<32x128xf32>
    %111 = arith.select %38, %105, %110 : vector<32x128xi1>, vector<32x128xf32>
    %c1_i32_38 = arith.constant 1 : i32
    %112 = tpu.dynamic_rotate %107 by %c1_i32_38 dim 1 : vector<32x128xf32>, i32 -> vector<32x128xf32>
    %113 = arith.select %36, %107, %112 : vector<32x128xi1>, vector<32x128xf32>
    %c127_i32_39 = arith.constant 127 : i32
    %114 = tpu.dynamic_rotate %107 by %c127_i32_39 dim 1 : vector<32x128xf32>, i32 -> vector<32x128xf32>
    %115 = arith.select %38, %107, %114 : vector<32x128xi1>, vector<32x128xf32>
    %116 = arith.addf %109, %105 : vector<32x128xf32>
    %117 = arith.addf %116, %111 : vector<32x128xf32>
    %c1_i32_40 = arith.constant 1 : i32
    %118 = tpu.dynamic_rotate %117 by %c1_i32_40 dim 0 : vector<32x128xf32>, i32 -> vector<32x128xf32>
    %119 = arith.select %45, %117, %118 : vector<32x128xi1>, vector<32x128xf32>
    %120 = arith.addf %119, %117 : vector<32x128xf32>
    %c31_i32_41 = arith.constant 31 : i32
    %121 = tpu.dynamic_rotate %117 by %c31_i32_41 dim 0 : vector<32x128xf32>, i32 -> vector<32x128xf32>
    %122 = arith.select %47, %117, %121 : vector<32x128xi1>, vector<32x128xf32>
    %123 = arith.addf %120, %122 : vector<32x128xf32>
    %cst_42 = arith.constant 0.111111112 : f32
    %124 = vector.broadcast %cst_42 : f32 to vector<32x128xf32>
    %125 = arith.mulf %123, %124 : vector<32x128xf32>
    %126 = arith.addf %113, %107 : vector<32x128xf32>
    %127 = arith.addf %126, %115 : vector<32x128xf32>
    %c1_i32_43 = arith.constant 1 : i32
    %128 = tpu.dynamic_rotate %127 by %c1_i32_43 dim 0 : vector<32x128xf32>, i32 -> vector<32x128xf32>
    %129 = arith.select %45, %127, %128 : vector<32x128xi1>, vector<32x128xf32>
    %130 = arith.addf %129, %127 : vector<32x128xf32>
    %c31_i32_44 = arith.constant 31 : i32
    %131 = tpu.dynamic_rotate %127 by %c31_i32_44 dim 0 : vector<32x128xf32>, i32 -> vector<32x128xf32>
    %132 = arith.select %47, %127, %131 : vector<32x128xi1>, vector<32x128xf32>
    %133 = arith.addf %130, %132 : vector<32x128xf32>
    %cst_45 = arith.constant 0.111111112 : f32
    %134 = vector.broadcast %cst_45 : f32 to vector<32x128xf32>
    %135 = arith.mulf %133, %134 : vector<32x128xf32>
    %136 = vector.extract_strided_slice %125 {offsets = [8, 0], sizes = [16, 128], strides = [1, 1]} : vector<32x128xf32> to vector<16x128xf32>
    %137 = arith.mulf %136, %1 : vector<16x128xf32>
    %138 = vector.extract_strided_slice %135 {offsets = [8, 0], sizes = [16, 128], strides = [1, 1]} : vector<32x128xf32> to vector<16x128xf32>
    %139 = arith.addf %137, %138 : vector<16x128xf32>
    %c0_46 = arith.constant 0 : index
    %c0_47 = arith.constant 0 : index
    %c0_48 = arith.constant 0 : index
    %140 = vector.load %arg8[%c0_46, %c0_47, %c0_48] : memref<1x16x128xf32, #tpu.memory_space<vmem>>, vector<1x16x128xf32>
    %141 = vector.shape_cast %140 : vector<1x16x128xf32> to vector<16x128xf32>
    %142 = vector.shape_cast %139 : vector<16x128xf32> to vector<1x16x128xf32>
    tpu.vector_store %arg8[%c0_46, %c0_47, %c0_48], %142 {strides = array<i32>} : memref<1x16x128xf32, #tpu.memory_space<vmem>>, vector<1x16x128xf32>,
    return
  }
  func.func @transform_0(%arg0: i32, %arg1: i32) -> (i32, i32, i32) {
    %c0_i32 = arith.constant 0 : i32
    %c0_i32_0 = arith.constant 0 : i32
    return %arg0, %arg1, %c0_i32 : i32, i32, i32
  }
  func.func @transform_1(%arg0: i32, %arg1: i32) -> (i32, i32, i32) {
    %c2_i32 = arith.constant 2 : i32
    %0 = arith.muli %arg1, %c2_i32 : i32
    %c1_i32 = arith.constant 1 : i32
    %1 = arith.subi %0, %c1_i32 : i32
    %c0_i32 = arith.constant 0 : i32
    %2 = arith.maxsi %1, %c0_i32 : i32
    %c0_i32_0 = arith.constant 0 : i32
    %c0_i32_1 = arith.constant 0 : i32
    return %arg0, %2, %c0_i32_0 : i32, i32, i32
  }
  func.func @transform_2(%arg0: i32, %arg1: i32) -> (i32, i32, i32) {
    %c1_i32 = arith.constant 1 : i32
    %0 = arith.addi %arg1, %c1_i32 : i32
    %c2_i32 = arith.constant 2 : i32
    %1 = arith.muli %0, %c2_i32 : i32
    %c7_i32 = arith.constant 7 : i32
    %2 = arith.minsi %1, %c7_i32 : i32
    %c0_i32 = arith.constant 0 : i32
    %c0_i32_0 = arith.constant 0 : i32
    return %arg0, %2, %c0_i32 : i32, i32, i32
  }
  func.func @transform_3(%arg0: i32, %arg1: i32) -> (i32, i32, i32) {
    %c0_i32 = arith.constant 0 : i32
    %c0_i32_0 = arith.constant 0 : i32
    return %arg0, %arg1, %c0_i32 : i32, i32, i32
  }
  func.func @transform_4(%arg0: i32, %arg1: i32) -> (i32, i32, i32) {
    %c2_i32 = arith.constant 2 : i32
    %0 = arith.muli %arg1, %c2_i32 : i32
    %c1_i32 = arith.constant 1 : i32
    %1 = arith.subi %0, %c1_i32 : i32
    %c0_i32 = arith.constant 0 : i32
    %2 = arith.maxsi %1, %c0_i32 : i32
    %c0_i32_0 = arith.constant 0 : i32
    %c0_i32_1 = arith.constant 0 : i32
    return %arg0, %2, %c0_i32_0 : i32, i32, i32
  }
  func.func @transform_5(%arg0: i32, %arg1: i32) -> (i32, i32, i32) {
    %c1_i32 = arith.constant 1 : i32
    %0 = arith.addi %arg1, %c1_i32 : i32
    %c2_i32 = arith.constant 2 : i32
    %1 = arith.muli %0, %c2_i32 : i32
    %c7_i32 = arith.constant 7 : i32
    %2 = arith.minsi %1, %c7_i32 : i32
    %c0_i32 = arith.constant 0 : i32
    %c0_i32_0 = arith.constant 0 : i32
    return %arg0, %2, %c0_i32 : i32, i32, i32
  }
  func.func @transform_6(%arg0: i32, %arg1: i32) -> (i32, i32, i32) {
    %c0_i32 = arith.constant 0 : i32
    %c0_i32_0 = arith.constant 0 : i32
    return %arg0, %arg1, %c0_i32 : i32, i32, i32
  }
}

</mosaic_0001>

<bundles_post_ra>
// kernel: tpu_custom_call.1
= control target key start
LH: loop header
LB: loop body
LE: loop exit
PB: predicated region body
PF: predicated region fallthrough
CT: control target
= control target key end

     0   :  { %s2741_s0 = inlined_call_operand.hbm [shape: f32[2,64,128], index: 0, kind: input, shape index: {}]   ;;  %s2742_s1 = inlined_call_operand.hbm [shape: f32[2,64,128], index: 1, kind: input, shape index: {}]   ;;  %s2743_s2 = inlined_call_operand.hbm [shape: f32[2,64,128], index: 2, kind: input, shape index: {}]   ;;  %s2744_s3 = inlined_call_operand.hbm [shape: f32[2,64,128], index: 3, kind: input, shape index: {}]   ;;  %s2745_s4 = inlined_call_operand.hbm [shape: f32[2,64,128], index: 4, kind: input, shape index: {}]   ;;  %s2746_s5 = inlined_call_operand.hbm [shape: f32[2,64,128], index: 5, kind: input, shape index: {}]   ;;  %s2747_s6 = inlined_call_operand.hbm [shape: f32[2,64,128], index: 6, kind: output, shape index: {}]  }
   0x1   :  { %2779 = sst [smem:[#allocation41_spill]] %s2742_s1 }
   0x2   :  { %2780 = sst [smem:[#allocation42_spill]] %s2743_s2 }
   0x3   :  { %2781 = sst [smem:[#allocation43_spill]] %s2744_s3 }
   0x4   :  { %2782 = sst [smem:[#allocation44_spill]] %s2745_s4 }
   0x5   :  { %2783 = sst [smem:[#allocation45_spill]] %s2746_s5 }
   0x6   :  { %2784 = sst [smem:[#allocation46_spill]] %s2747_s6 }
   0x7   :  { %11 = vsyncpa [#allocation3], 0 }
   0x8   :  { %13 = vsyncpa [#allocation3 + $0x1], 0 }
   0x9   :  { %14 = vsyncpa [#allocation6], 0 }
   0xa   :  { %16 = vsyncpa [#allocation6 + $0x1], 0 }
   0xb   :  { %17 = vsyncpa [#allocation9], 0 }
   0xc   :  { %19 = vsyncpa [#allocation9 + $0x1], 0 }
   0xd   :  { %20 = vsyncpa [#allocation12], 0 }
   0xe   :  { %22 = vsyncpa [#allocation12 + $0x1], 0 }
   0xf   :  { %23 = vsyncpa [#allocation4], 0 }
  0x10   :  { %25 = vsyncpa [#allocation4 + $0x1], 0  ;;  %s1829_s21 = smov 0   ;;  %s1831_s22 = smov 0  }
  0x11   :  { %s1833_s23 = smov 0   ;;  %s1835_s24 = smov 0  }
  0x12   :  { %s1837_s25 = smov 0   ;;  %s1839_s26 = smov 0  }
  0x13   :  { %s1841_s27 = smov 0   ;;  %s1843_s28 = smov 0  }
  0x14   :  { %s1845_s29 = smov 0   ;;  %s1847_s30 = smov 0  }
  0x15   :  { %s1849_s7 = smov 0   ;;  %s1851_s8 = smov 0  }
  0x16   :  { %s1853_s9 = smov 0   ;;  %s1855_s10 = smov 0  }
  0x17 LB: > { %2785 = sst [smem:[#allocation21_spill]] %s1743_s25  ;;  %s1900_s11 = sadd.s32 4294967295, %s1779_s10   ;;  %s1779_s10 = sphi %s1855_s10, %s31_s10   ;;  %s1775_s9 = sphi %s1853_s9, %s2861_s9   ;;  %s1771_s8 = sphi %s1851_s8, %s2860_s8   ;;  %s1767_s7 = sphi %s1849_s7, %s2859_s7   ;;  %s1763_s30 = sphi %s1847_s30, %s2858_s30   ;;  %s1759_s29 = sphi %s1845_s29, %s2866_s29   ;;  %s1755_s28 = sphi %s1843_s28, %s2865_s28   ;;  %s1751_s27 = sphi %s1841_s27, %s2856_s27   ;;  %s1747_s26 = sphi %s1839_s26, %s2855_s26   ;;  %s1743_s25 = sphi %s1837_s25, %s2854_s25   ;;  %s1739_s24 = sphi %s1835_s24, %s2853_s24   ;;  %s1735_s23 = sphi %s1833_s23, %s2864_s23   ;;  %s1731_s22 = sphi %s1831_s22, %s2863_s22   ;;  %s1727_s21 = sphi %s1829_s21, %s2862_s21  }
  0x18   : > { %2786 = sst [smem:[#allocation22_spill]] %s1747_s26  ;;  %s40_s12 = sadd.s32 1, %s1771_s8 }
  0x19   : > { %2787 = sst [smem:[#allocation23_spill]] %s1751_s27  ;;  %p41_p0 = scmp.ge.s32.totalorder %s40_s12, 4 }
  0x1a   : > { %2788 = sst [smem:[#allocation24_spill]] %s1755_s28  ;;  %s43_s13 = sadd.s32 1, %s1775_s9 }
  0x1b   : > { %2789 = sst [smem:[#allocation25_spill]] %s1763_s30  ;;  %p2770_p1 = scmp.eq.s32.totalorder %s1779_s10, 0 }
  0x1c   : > { %2790 = sst [smem:[#allocation26_spill]] %s1767_s7  ;;  %p2761_p2 = scmp.eq.s32.totalorder %s1900_s11, 0 }
  0x1d   : > { %2791 = sst [smem:[#allocation27_spill]] %s1771_s8  ;;  %s2868_s12 = smov (%p41_p0, %s40_s12), 0 }
  0x1e   : > { %2792 = sst [smem:[#allocation28_spill]] %s1775_s9  ;;  %s2870_s13 = smov (!%p41_p0, %s43_s13), %s1775_s9 }
  0x1f   : > { %2793 = sst [smem:[#allocation29_spill]] %s2868_s12  ;;  %s48_s14 = ssub.s32 %s1771_s8, %s2868_s12 }
  0x20   : > { %s1912_s15 = sshll.u32 %s1771_s8, 1  ;;  %p45_p3 = scmp.ge.s32.totalorder %s2870_s13, 2 }
  0x21   : > { %s1215_s16 = sadd.s32 4294967295, %s1912_s15  ;;  %s1216_s17 = sshll.u32 %s2868_s12, 1 }
  0x22   : > { %p77_p4 = scmp.gt.s32.totalorder %s1215_s16, 0  ;;  %s2872_s13 = smov (%p45_p3, %s2870_s13), 0 }
  0x23   : > { %2794 = sst [smem:[#allocation30_spill]] %s2872_s13  ;;  %s1920_s18 = ssub.s32 %s1775_s9, %s2872_s13 }
  0x24   : > { %s2874_s16 = smov (!%p77_p4, %s1215_s16), 0  ;;  %2795 = sst [smem:[#allocation31_spill]] %s1920_s18 }
  0x25   : > { %s1217_s19 = sadd.s32 4294967295, %s1216_s17  ;;  %s1923_s20 = sor.u32 %s48_s14, %s1920_s18 }
  0x26   : > { %p81_p5 = scmp.gt.s32.totalorder %s1217_s19, 0  ;;  %p50_p6 = scmp.eq.s32.totalorder %s1923_s20, 0 }
  0x27   : > { %s88_s12 = sadd.s32 1, %s1747_s26  ;;  %p95_p7 = scmp.ne.s32.totalorder %s1747_s26, %s1743_s25 }
  0x28   : > { %s2876_s19 = smov (!%p81_p5, %s1217_s19), 0  ;;  %p101_p8 = scmp.ne.s32.totalorder %s1743_s25, %s1739_s24 }
  0x29   : > { %s84_s13 = ssub.s32 %s2874_s16, %s2876_s19  ;;  %s1931_s8 = sadd.s32 2, %s1216_s17 }
  0x2a   : > { %s85_s6 = sor.u32 %s84_s13, %s1920_s18  ;;  %p1936_p9 = por %p95_p7, %p2770_p1 }
  0x2b   : > { %p86_p10 = scmp.eq.s32.totalorder %s85_s6, 0  ;;  %p1942_p11 = por %p101_p8, %p2761_p2 }
  0x2c   : > { %p263_p13 = scmp.eq.s32.totalorder %s1900_s11, 7  ;;  %p2758_p0 = scmp.lt.s32.totalorder %s1779_s10, 8 }
  0x2d   : > { %s2797_s7 = scalar_select %p1942_p11, 1, 0 }
  0x2e   : > { %s1949_s24 = scalar_select %p86_p10, %s1747_s26, %s88_s12  }
  0x2f   : > { %2798 = sst [smem:[#allocation32_spill]] %s2797_s7  ;;  %s1953_s13 = sshll.u32 %s1775_s9, 3 }
  0x30   : > { %2799 = sst [smem:[#allocation33_spill]] %s1949_s24  ;;  %s2759_s17 = sand.u32 1, %s1779_s10  }
  0x31   : > { %s299_s19 = sadd.s32 %s1953_s13, %s1912_s15  ;;  %s314_s6 = sand.u32 1, %s1747_s26  }
  0x32   : > { %s325_s30 = sadd.s32 %s1953_s13, %s2874_s16  ;;  %s1960_s25 = sshll.u32 %s314_s6, 3 }
  0x33   : > { %s1962_s5 = sshll.u32 %s325_s30, 7  ;;  %s2801_s1 = sld [smem:[#allocation41_spill]] }
  0x34   : > { %2800 = sst [smem:[#allocation34_spill]] %s1962_s5  ;;  %s316_s24 = scalar_lea.vmem [#allocation5], %s1960_s25 }
  0x35   : > { %s329_s18 = sshll.u32 %s316_s24, 4  ;;  %p1973_p3 = pnand %p2758_p0, %p1936_p9  ;;  %s330_s18 = int_to_ptr.vmem [resolvable:$true] %s329_s18 }
  0x36   : > { %s1979_s16 = scalar_lea.sflag [#allocation6], %s2759_s17  ;;  %s1460_s30 = scalar_lea.vmem %s330_s18, 128 }
  0x37   : > { %s2802_s9 = scalar_select %p1973_p3, 1, 0 }
  0x38   : > { %p2760_p4 = pneg %p1973_p3  ;;  %p1461_p5 = scmp.ne.s32.totalorder %s330_s18, %s1460_s30 }
  0x39   : > { %s327_s12 = scalar_lea.hbm %s2801_s1, %s1962_s5  ;;  %2803 = sst [smem:[#allocation35_spill]] %s2802_s9 }
  0x3a   : > { %p1463_p7 = pnand %p1461_p5, %p2760_p4  ;;  %s1781_s2 = smov [#allocation5]  }
  0x3b   : > { %s1465_s7 = sshll.u32 %s1781_s2, 4  ;;  %s1466_s7 = int_to_ptr.vmem [resolvable:$false] %s1465_s7 }
  0x3c   : > { %p1464_p8 = pneg %p1463_p7  ;;  %s1467_s14 = scalar_lea.vmem %s1466_s7, 256 }
  0x3d   : > { %p1468_p9 = scmp.lt.s32.totalorder %s330_s18, %s1466_s7  ;;  %p1469_p10 = scmp.lt.s32.totalorder %s1467_s14, %s1460_s30 }
  0x3f   : > { %p1470_p12 = por %p1469_p10, %p1468_p9 }
  0x41   : > { %p1471_p0 = pnand %p1470_p12, %p1464_p8 }
  0x43   : > { %1474 = shalt.err (!%p1471_p0)
}
  0x44   : > { %1302 = dma.hbm_to_vmem [thread:$0]  (!%p1973_p3), %s327_s12, 128, %s330_s18, %s1979_s16  }
  0x45   : > { %p1254_p12 = scmp.ge.s32.totalorder %s1779_s10, 1  ;;  %p429_p0 = scmp.lt.s32.totalorder %s1779_s10, 9 }
  0x46   : > { %s1213_s7 = sadd.s32 4294967294, %s1779_s10   ;;  %s52_s14 = sadd.s32 1, %s1759_s29 }
  0x47   : > { %p1995_p5 = pnand %p1254_p12, %p429_p0  ;;  %p59_p7 = scmp.ne.s32.totalorder %s1759_s29, %s1755_s28 }
  0x48   : > { %s2004_s17 = scalar_select %p50_p6, %s1759_s29, %s52_s14  }
  0x49   : > { %s2805_s2 = scalar_select %p1995_p5, 1, 0 }
  0x4a   : > { %2807 = sst [smem:[#allocation37_spill]] %s2004_s17  ;;  %p65_p8 = scmp.ne.s32.totalorder %s1755_s28, %s1751_s27 }
  0x4b   : > { %2806 = sst [smem:[#allocation36_spill]] %s2805_s2  ;;  %p269_p9 = scmp.eq.s32.totalorder %s1213_s7, 7 }
  0x4c   : > { %s2764_s18 = sand.u32 1, %s1759_s29   ;;  %p61_p10 = por %p2770_p1, %p59_p7 }
  0x4d   : > { %p2015_p4 = por %p2761_p2, %p65_p8  ;;  %p2021_p12 = por %p263_p13, %p59_p7 }
  0x4e   : > { %p2025_p0 = por %p269_p9, %p65_p8  ;;  %s2031_s6 = sshll.u32 %s2764_s18, 4 }
  0x4f   : > { %s2808_s12 = scalar_select %p2015_p4, 1, 0 }
  0x50   : > { %s2810_s24 = scalar_select %p2021_p12, 1, 0 }
  0x51   : > { %2809 = sst [smem:[#allocation38_spill]] %s2808_s12  ;;  %s2036_s7 = sshll.u32 %s299_s19, 7 }
  0x52   : > { %2811 = sst [smem:[#allocation39_spill]] %s2810_s24  ;;  %p2814_p6 = scmp.lt.s32.totalorder %s1779_s10, 8 }
  0x53   : > { %s2812_s20 = scalar_select %p2025_p0, 1, 0 }
  0x54   : > { %p2040_p2 = pnand %p2814_p6, %p61_p10  ;;  %s2816_s3 = sld [smem:[#allocation43_spill]] }
  0x55   : > { %2813 = sst [smem:[#allocation40_spill]] %s2812_s20  ;;  %s364_s26 = scalar_lea.vmem [#allocation8], %s2031_s6 }
  0x56   : > { %s373_s20 = sshll.u32 %s364_s26, 4  ;;  %s2817_s18 = sand.u32 1, %s1779_s10   ;;  %s374_s20 = int_to_ptr.vmem [resolvable:$true] %s373_s20 }
  0x57   : > { %s2051_s27 = scalar_lea.sflag [#allocation9], %s2817_s18  ;;  %p1477_p13 = pneg %p2040_p2 }
  0x58   : > { %s1488_s19 = scalar_lea.vmem %s374_s20, 256  ;;  %s1782_s24 = smov [#allocation8]  }
  0x59   : > { %p1489_p7 = scmp.ne.s32.totalorder %s374_s20, %s1488_s19  ;;  %s1493_s12 = sshll.u32 %s1782_s24, 4  ;;  %s1494_s12 = int_to_ptr.vmem [resolvable:$false] %s1493_s12 }
  0x5a   : > { %s372_s17 = scalar_lea.hbm %s2816_s3, %s2036_s7  ;;  %s1495_s1 = scalar_lea.vmem %s1494_s12, 512 }
  0x5b   : > { %p1491_p8 = pnand %p1489_p7, %p1477_p13  ;;  %p1496_p10 = scmp.lt.s32.totalorder %s374_s20, %s1494_s12 }
  0x5c   : > { %p1497_p6 = scmp.lt.s32.totalorder %s1495_s1, %s1488_s19 }
  0x5d   : > { %p1492_p9 = pneg %p1491_p8 }
  0x5e   : > { %p1498_p1 = por %p1497_p6, %p1496_p10 }
  0x60   : > { %p1499_p0 = pnand %p1498_p1, %p1492_p9 }
  0x62   : > { %1502 = shalt.err (!%p1499_p0)
}
  0x63   : > { %s1783_s26 = smov 128   ;;  %s1784_s30 = smov 8  }
  0x64   : > { %1308 = dma.hbm_to_vmem [thread:$0]  (!%p2040_p2), %s372_s17, 256, %s374_s20, %s2051_s27, %s1783_s26, %s1783_s26, %s1784_s30  }
  0x65   : > { %s301_s24 = scalar_lea.hbm %s2741_s0, %s2036_s7  ;;  %s293_s28 = scalar_lea.vmem [#allocation2], %s2031_s6 }
  0x66   : > { %s302_s12 = sshll.u32 %s293_s28, 4  ;;  %s2818_s19 = sand.u32 1, %s1759_s29   ;;  %s303_s12 = int_to_ptr.vmem [resolvable:$true] %s302_s12 }
  0x67   : > { %s290_s1 = scalar_lea.sflag [#allocation3], %s2818_s19  ;;  %s1516_s2 = scalar_lea.vmem %s303_s12, 256 }
  0x68   : > { %p1517_p1 = scmp.ne.s32.totalorder %s303_s12, %s1516_s2  ;;  %s1785_s5 = smov [#allocation2]  }
  0x69   : > { %s1521_s4 = sshll.u32 %s1785_s5, 4  ;;  %s1522_s4 = int_to_ptr.vmem [resolvable:$false] %s1521_s4 }
  0x6a   : > { %p1519_p0 = pnand %p1517_p1, %p1477_p13  ;;  %s1523_s9 = scalar_lea.vmem %s1522_s4, 512 }
  0x6b   : > { %p1524_p8 = scmp.lt.s32.totalorder %s303_s12, %s1522_s4  ;;  %p1525_p9 = scmp.lt.s32.totalorder %s1523_s9, %s1516_s2 }
  0x6c   : > { %p1520_p7 = pneg %p1519_p0 }
  0x6d   : > { %p1526_p10 = por %p1525_p9, %p1524_p8 }
  0x6f   : > { %p1527_p6 = pnand %p1526_p10, %p1520_p7 }
  0x71   : > { %1530 = shalt.err (!%p1527_p6)
}
  0x72   : > { %s2819_s3 = sld [smem:[#allocation31_spill]]  ;;  %s1271_s4 = sadd.s32 2, %s1912_s15 }
  0x73   : > { %1299 = dma.hbm_to_vmem [thread:$0]  (!%p2040_p2), %s301_s24, 256, %s303_s12, %s290_s1, %s1783_s26, %s1783_s26, %s1784_s30  }
  0x74   : > { %p113_p13 = scmp.lt.s32.totalorder %s1271_s4, 7  ;;  %s124_s5 = sadd.s32 1, %s1735_s23 }
  0x75   : > { %p2820_p1 = scmp.lt.s32.totalorder %s1931_s8, 7  ;;  %p131_p0 = scmp.ne.s32.totalorder %s1735_s23, %s1731_s22 }
  0x76   : > { %s2880_s4 = smov (!%p113_p13, %s1271_s4), 7  ;;  %p137_p7 = scmp.ne.s32.totalorder %s1731_s22, %s1727_s21 }
  0x77   : > { %s2878_s8 = smov (!%p2820_p1, %s1931_s8), 7  ;;  %s338_s9 = sand.u32 1, %s1735_s23  }
  0x78   : > { %s120_s28 = ssub.s32 %s2880_s4, %s2878_s8  ;;  %p2821_p8 = scmp.eq.s32.totalorder %s1779_s10, 0 }
  0x79   : > { %s121_s17 = sor.u32 %s120_s28, %s2819_s3  ;;  %p2822_p6 = scmp.eq.s32.totalorder %s1900_s11, 0 }
  0x7a   : > { %p133_p9 = por %p131_p0, %p2821_p8  ;;  %p122_p10 = scmp.eq.s32.totalorder %s121_s17, 0 }
  0x7b   : > { %p2088_p12 = por %p137_p7, %p2822_p6  ;;  %s2094_s15 = sshll.u32 %s338_s9, 3 }
  0x7c   : > { %s349_s20 = sadd.s32 %s1953_s13, %s2880_s4  ;;  %s2824_s14 = sld [smem:[#allocation42_spill]] }
  0x7d   : > { %s2823_s2 = scalar_select %p2088_p12, 1, 0 }
  0x7e   : > { %s2098_s6 = scalar_select %p122_p10, %s1735_s23, %s124_s5  }
  0x7f   : > { %s2100_s21 = sshll.u32 %s349_s20, 7  ;;  %s340_s30 = scalar_lea.vmem [#allocation7], %s2094_s15 }
  0x80   : > { %s353_s18 = sshll.u32 %s340_s30, 4  ;;  %p2825_p2 = scmp.lt.s32.totalorder %s1779_s10, 8  ;;  %s354_s18 = int_to_ptr.vmem [resolvable:$true] %s353_s18 }
  0x81   : > { %s387_s13 = scalar_lea.vmem [#allocation10], %s1960_s25  ;;  %s1544_s19 = scalar_lea.vmem %s354_s18, 128 }
  0x82   : > { %s351_s26 = scalar_lea.hbm %s2824_s14, %s2100_s21  ;;  %p2109_p13 = pnand %p2825_p2, %p133_p9 }
  0x83   : > { %s400_s12 = sshll.u32 %s387_s13, 4  ;;  %p1545_p0 = scmp.ne.s32.totalorder %s354_s18, %s1544_s19  ;;  %s2114_s12 = int_to_ptr.vmem [resolvable:$true] %s400_s12 }
  0x84   : > { %p2777_p1 = pneg %p2109_p13  ;;  %s1786_s1 = smov [#allocation7]  }
  0x85   : > { %s1549_s3 = sshll.u32 %s1786_s1, 4  ;;  %s1550_s3 = int_to_ptr.vmem [resolvable:$false] %s1549_s3 }
  0x86   : > { %p1547_p7 = pnand %p1545_p0, %p2777_p1  ;;  %s1551_s4 = scalar_lea.vmem %s1550_s3, 256 }
  0x87   : > { %p1552_p9 = scmp.lt.s32.totalorder %s354_s18, %s1550_s3  ;;  %p1553_p10 = scmp.lt.s32.totalorder %s1551_s4, %s1544_s19 }
  0x88   : > { %p1548_p8 = pneg %p1547_p7 }
  0x89   : > { %p1554_p6 = por %p1553_p10, %p1552_p9 }
  0x8b   : > { %p1555_p2 = pnand %p1554_p6, %p1548_p8 }
  0x8d   : > { %1558 = shalt.err (!%p1555_p2)
}
  0x8e   : > { %1305 = dma.hbm_to_vmem [thread:$0]  (!%p2109_p13), %s351_s26, 128, %s354_s18, %s1979_s16  }
  0x8f   : > { %s1572_s5 = scalar_lea.vmem %s2114_s12, 128  ;;  %p2828_p7 = pneg %p1973_p3 }
  0x90   : > { %p1573_p0 = scmp.ne.s32.totalorder %s2114_s12, %s1572_s5  ;;  %s1787_s28 = smov [#allocation10]  }
  0x91   : > { %s1577_s17 = sshll.u32 %s1787_s28, 4  ;;  %s1578_s17 = int_to_ptr.vmem [resolvable:$false] %s1577_s17 }
  0x92   : > { %p1575_p1 = pnand %p1573_p0, %p2828_p7  ;;  %s1579_s20 = scalar_lea.vmem %s1578_s17, 256 }
  0x93   : > { %p1580_p8 = scmp.lt.s32.totalorder %s2114_s12, %s1578_s17  ;;  %p1581_p9 = scmp.lt.s32.totalorder %s1579_s20, %s1572_s5 }
  0x94   : > { %p1576_p12 = pneg %p1575_p1 }
  0x95   : > { %p1582_p10 = por %p1581_p9, %p1580_p8 }
  0x97   : > { %p1583_p6 = pnand %p1582_p10, %p1576_p12 }
  0x99   : > { %1586 = shalt.err (!%p1583_p6)
}
  0x9a   : > { %s2829_s7 = sld [smem:[#allocation44_spill]]  ;;  %s411_s1 = scalar_lea.vmem [#allocation11], %s2094_s15 }
  0x9b   : > { %s2830_s14 = sld [smem:[#allocation34_spill]]  ;;  %s424_s3 = sshll.u32 %s411_s1, 4  ;;  %s425_s3 = int_to_ptr.vmem [resolvable:$true] %s424_s3 }
  0x9c   : > { %s2832_s13 = sld [smem:[#allocation45_spill]]  ;;  %s408_s4 = scalar_lea.sflag [#allocation12], %s338_s9 }
  0x9d   : > { %s1600_s25 = scalar_lea.vmem %s425_s3, 128  ;;  %p2833_p1 = pneg %p2109_p13 }
  0x9e   : > { %p1601_p12 = scmp.ne.s32.totalorder %s425_s3, %s1600_s25  ;;  %s1788_s5 = smov [#allocation11]  }
  0x9f   : > { %s1605_s28 = sshll.u32 %s1788_s5, 4  ;;  %s1606_s28 = int_to_ptr.vmem [resolvable:$false] %s1605_s28 }
  0xa0   : > { %p1603_p2 = pnand %p1601_p12, %p2833_p1  ;;  %s1607_s17 = scalar_lea.vmem %s1606_s28, 256 }
  0xa1   : > { %s2831_s26 = scalar_lea.hbm %s2829_s7, %s2830_s14  ;;  %p1609_p7 = scmp.lt.s32.totalorder %s1607_s17, %s1600_s25 }
  0xa2   : > { %1311 = dma.hbm_to_vmem [thread:$0]  (!%p1973_p3), %s2831_s26, 128, %s2114_s12, %s2051_s27  }
  0xa3   : > { %s422_s19 = scalar_lea.hbm %s2832_s13, %s2100_s21  ;;  %p1604_p0 = pneg %p1603_p2 }
  0xa4   : > { %p1608_p3 = scmp.lt.s32.totalorder %s425_s3, %s1606_s28 }
  0xa6   : > { %p1610_p8 = por %p1609_p7, %p1608_p3 }
  0xa8   : > { %p1611_p9 = pnand %p1610_p8, %p1604_p0 }
  0xaa   : > { %1614 = shalt.err (!%p1611_p9)
}
  0xab   : > { %1314 = dma.hbm_to_vmem [thread:$0]  (!%p2109_p13), %s422_s19, 128, %s425_s3, %s408_s4  }
  0xac   : > { %433 = sbr.rel (%p1995_p5) target bundleno = 556 (0x22c), region = 44  ;;  %s2835_s9 = sld [smem:[#allocation24_spill]] (!%p1995_p5) }
  0xb2   : > { %s2154_s21 = sand.u32 1, %s2835_s9  }
  0xb3   : > { %s2157_s12 = sshll.u32 %s2154_s21, 4  ;;  %s436_s20 = scalar_lea.sflag [#allocation3], %s2154_s21 }
  0xb4   : > { %s439_s16 = scalar_lea.vmem [#allocation2], %s2157_s12 }
  0xb5   : > { %1698 = dma.done.wait (%p2015_p4), %s436_s20, 256  }
  0xb6   : > { %1700 = vsyncadd (%p2015_p4), %s436_s20, 4294967040  ;;  %s2837_s24 = sld [smem:[#allocation21_spill]]  ;;  %s444_s7 = sand.u32 1, %s1900_s11  }
  0xb7   : > { %s445_s30 = scalar_lea.sflag [#allocation6], %s444_s7 }
  0xbc   : > { %s446_s14 = sand.u32 1, %s2837_s24  }
  0xbd   : > { %s2167_s26 = sshll.u32 %s446_s14, 3 }
  0xbe   : > { %s448_s18 = scalar_lea.vmem [#allocation5], %s2167_s26 }
  0xbf   : > { %1702 = dma.done.wait (%p1942_p11), %s445_s30, 128  }
  0xc0   : > { %1704 = vsyncadd (%p1942_p11), %s445_s30, 4294967168  ;;  %s455_s13 = sand.u32 1, %s1731_s22   ;;  %p2839_p5 = scmp.ne.s32.totalorder %s2823_s2, 0 }
  0xc1   : > { %s2175_s19 = sshll.u32 %s455_s13, 3 }
  0xc2   : > { %s457_s1 = scalar_lea.vmem [#allocation7], %s2175_s19 }
  0xc3   : > { %1706 = dma.done.wait (%p2839_p5), %s445_s30, 128  }
  0xc4   : > { %1708 = vsyncadd (%p2839_p5), %s445_s30, 4294967168  ;;  %s463_s11 = scalar_lea.sflag [#allocation9], %s444_s7  ;;  %s466_s3 = scalar_lea.vmem [#allocation8], %s2157_s12 }
  0xc5   : > { %1710 = dma.done.wait (%p2015_p4), %s463_s11, 256  }
  0xc6   : > { %1712 = vsyncadd (%p2015_p4), %s463_s11, 4294967040  ;;  %s475_s4 = scalar_lea.vmem [#allocation10], %s2167_s26 }
  0xc7   : > { %1714 = dma.done.wait (%p1942_p11), %s463_s11, 128  }
  0xc8   : > { %1716 = vsyncadd (%p1942_p11), %s463_s11, 4294967168  ;;  %s481_s25 = scalar_lea.sflag [#allocation12], %s455_s13  ;;  %s484_s5 = scalar_lea.vmem [#allocation11], %s2175_s19 }
  0xc9   : > { %1718 = dma.done.wait (%p2839_p5), %s481_s25, 128  }
  0xca   : > { %1720 = vsyncadd (%p2839_p5), %s481_s25, 4294967168  ;;  %s2840_s28 = sld [smem:[#allocation25_spill]]  ;;  %v562_v0 = vlaneseq  ;;  %v2205_v5 = vld [vmem:[%s439_s16 + $0x8] sm:$0xff]  ;;  %v2209_v6 = vld [vmem:[%s439_s16] sm:$0xff]  ;;  %s1789_s2 = smov 1  }
  0xcb   : > { %v566_v7 = vld [vmem:[%s448_s18] sm:$0xff]  ;;  %614 = vrot.lane.b32.xlu1 %v2205_v5, %s1789_s2  ;;  %612 = vrot.lane.b32.xlu0 %v2209_v6, %s1789_s2  ;;  %v582_v13 = vld [vmem:[%s457_s1] sm:$0xff]  ;;  %s1790_s9 = smov 127   ;;  %v663_v29 = vmul.f32 %v2209_v6, %v2209_v6  ;;  %v664_v37 = vmul.f32 %v2205_v5, %v2205_v5  ;;  %s2845_s16 = sld [smem:[#allocation26_spill]] }
  0xcc   : > { %v2199_v1 = vshrl.u32 %v562_v0, 7  ;;  %v2240_v16 = vld [vmem:[%s466_s3] sm:$0xff]  ;;  %v2250_v19 = vld [vmem:[%s466_s3 + $0x8] sm:$0xff]  ;;  %v2283_v24 = vand.u32 127, %v562_v0  ;;  %s2846_s14 = sld [smem:[#allocation39_spill]]  ;;  %s537_s26 = scalar_lea.vmem [#allocation13], %s2157_s12 }
  0xcd   : > { %v575_v18 = vld [vmem:[%s475_s4] sm:$0xff]  ;;  %v591_v22 = vld [vmem:[%s484_s5] sm:$0xff]  ;;  %v2329_v46 = vmul.f32 %v2240_v16, %v2209_v6  ;;  %s1002_s30 = sshll.u32 %s537_s26, 4  ;;  %s2847_s1 = sld [smem:[#allocation46_spill]]  ;;  %s2659_s30 = int_to_ptr.vmem [resolvable:$true] %s1002_s30 }
  0xce   : > { %v564_v2 = vsub.s32 0, %v2199_v1  ;;  %v580_v4 = vsub.s32 7, %v2199_v1  ;;  %vm595_vm2 = vcmp.eq.s32.totalorder %v2283_v24, 0  ;;  %vm596_vm3 = vcmp.eq.s32.totalorder %v2283_v24, 127  ;;  %s987_s12 = scalar_lea.sflag [#allocation4], %s2154_s21  ;;  %s1615_s3 = scalar_lea.vmem %s2659_s30, 256 }
  0xcf   : > { %624 = vrot.lane.b32.xlu1 %v2209_v6, %s1790_s9  ;;  %vm694_vm4 = vcmp.lt.s32.totalorder %v2199_v1, 1  ;;  %vm707_vm5 = vcmp.lt.s32.totalorder %v2199_v1, 7  ;;  %p1616_p11 = scmp.ne.s32.totalorder %s2659_s30, %s1615_s3  ;;  %s1791_s4 = smov [#allocation13]  }
  0xd0   : > { %p561_p4 = scmp.eq.s32.totalorder %s2840_s28, 0  ;;  %p577_p13 = scmp.eq.s32.totalorder %s2840_s28, 3  ;;  %v565_v10 = vrot.slane %v2209_v6, %v564_v2  ;;  %v581_v11 = vrot.slane %v2205_v5, %v580_v4  ;;  %v574_v17 = vrot.slane %v2240_v16, %v564_v2  ;;  %v590_v21 = vrot.slane %v2250_v19, %v580_v4 }
  0xd1   : > { %s1262_s15 = sshll.u32 %s2840_s28, 4  ;;  %s1265_s24 = sshll.u32 %s2840_s28, 1 }
  0xd2   : > { %s567_s17 = scalar_select %p561_p4, 1, 0 }
  0xd3   : > { %s583_s27 = scalar_select %p577_p13, 1, 0 }
  0xd4   : > { %v568_v3 = vstv %s567_s17  ;;  %s1263_s20 = sadd.s32 4294967288, %s1262_s15  ;;  %s1266_s8 = sshll.u32 %s2845_s16, 3 }
  0xd5   : > { %vm2213_vm0 = vcmp.eq.s32.totalorder %v568_v3, 1  ;;  %v584_v9 = vstv %s583_s27  ;;  %s999_s7 = sadd.s32 %s1266_s8, %s1265_s24  ;;  %p2848_p10 = scmp.ne.s32.totalorder %s2846_s14, 0 }
  0xd6   : > { %v570_v12 = vsel %vm2213_vm0, %v565_v10, %v566_v7  ;;  %vm2227_vm1 = vcmp.eq.s32.totalorder %v584_v9, 1  ;;  %v2258_v20 = vsel %vm2213_vm0, %v574_v17, %v575_v18  ;;  %s1267_s18 = sshll.u32 %s999_s7, 7  ;;  %s1619_s25 = sshll.u32 %s1791_s4, 4  ;;  %s1620_s25 = int_to_ptr.vmem [resolvable:$false] %s1619_s25 }
  0xd7   : > { %610 = vrot.lane.b32.xlu0 %v570_v12, %s1789_s2  ;;  %v2236_v15 = vsel %vm2227_vm1, %v581_v11, %v582_v13  ;;  %v2269_v23 = vsel %vm2227_vm1, %v590_v21, %v591_v22  ;;  %v662_v39 = vmul.f32 %v570_v12, %v570_v12  ;;  %v2342_v50 = vmul.f32 %v2258_v20, %v570_v12  ;;  %s2664_s11 = scalar_lea.hbm %s2847_s1, %s1267_s18  ;;  %p1617_p6 = pnand %p1616_p11, %p2848_p10 }
  0xd8   : > { %616 = vrot.lane.b32.xlu1 %v2236_v15, %s1789_s2  ;;  %v665_v40 = vmul.f32 %v2236_v15, %v2236_v15  ;;  %v2352_v54 = vmul.f32 %v2269_v23, %v2236_v15  ;;  %s1621_s5 = scalar_lea.vmem %s1620_s25, 512  ;;  %p1622_p1 = scmp.lt.s32.totalorder %s2659_s30, %s1620_s25 }
  0xd9   : > { %p1618_p12 = pneg %p1617_p6  ;;  %p1623_p2 = scmp.lt.s32.totalorder %s1621_s5, %s1615_s3 }
  0xdb   : > { %622 = vrot.lane.b32.xlu0 %v570_v12, %s1790_s9  ;;  %p1624_p0 = por %p1623_p2, %p1622_p1 }
  0xdc   : > { %628 = vrot.lane.b32.xlu1 %v2236_v15, %s1790_s9 }
  0xdd   : > { %p1625_p3 = pnand %p1624_p0, %p1618_p12 }
  0xdf   : > { %626 = vrot.lane.b32.xlu0 %v2205_v5, %s1790_s9 }
  0xe0   : > { %636 = vrot.lane.b32.xlu1 %v2240_v16, %s1789_s2 }
  0xe3   : > { %634 = vrot.lane.b32.xlu0 %v2258_v20, %s1789_s2 }
  0xe4   : > { %640 = vrot.lane.b32.xlu1 %v2269_v23, %s1789_s2 }
  0xe7   : > { %638 = vrot.lane.b32.xlu0 %v2250_v19, %s1789_s2 }
  0xe8   : > { %648 = vrot.lane.b32.xlu1 %v2240_v16, %s1790_s9 }
  0xeb   : > { %646 = vrot.lane.b32.xlu0 %v2258_v20, %s1790_s9 }
  0xec   : > { %652 = vrot.lane.b32.xlu1 %v2269_v23, %s1790_s9 }
  0xef   : > { %650 = vrot.lane.b32.xlu0 %v2250_v19, %s1790_s9 }
 0x13d   : > { %v615_v25 = vpop.permute.xlu1 %614  ;;  %v613_v26 = vpop.permute.xlu0 %612 }
 0x13e   : > { %v2289_v27 = vsel %vm595_vm2, %v2209_v6, %v613_v26  ;;  %v2299_v32 = vsel %vm595_vm2, %v2205_v5, %v615_v25 }
 0x13f   : > { %v659_v28 = vmul.f32 %v2289_v27, %v2289_v27  ;;  %v683_v35 = vadd.f32 %v2289_v27, %v2209_v6  ;;  %v660_v41 = vmul.f32 %v2299_v32, %v2299_v32  ;;  %v684_v55 = vadd.f32 %v2299_v32, %v2205_v5 }
 0x141   : > { %v625_v30 = vpop.permute.xlu1 %624  ;;  %v757_v42 = vadd.f32 %v663_v29, %v659_v28  ;;  %v758_v59 = vadd.f32 %v664_v37, %v660_v41 }
 0x142   : > { %v2304_v33 = vsel %vm596_vm3, %v2209_v6, %v625_v30 }
 0x143   : > { %v667_v36 = vmul.f32 %v2304_v33, %v2304_v33  ;;  %v2325_v43 = vadd.f32 %v683_v35, %v2304_v33 }
 0x145   : > { %v2344_v51 = vadd.f32 %v757_v42, %v667_v36  ;;  %v691_v60 = vrot.slane %v2325_v43, 7  ;;  %v704_v61 = vrot.slane %v2325_v43, 1 }
 0x147   : > { %v765_v8 = vrot.slane %v2344_v51, 7 }
 0x149   : > { %v611_v31 = vpop.permute.xlu0 %610 }
 0x14a   : > { %v2308_v34 = vsel %vm595_vm2, %v570_v12, %v611_v31  ;;  %v617_v44 = vpop.permute.xlu1 %616 }
 0x14b   : > { %v658_v38 = vmul.f32 %v2308_v34, %v2308_v34  ;;  %v682_v47 = vadd.f32 %v2308_v34, %v570_v12  ;;  %v2335_v48 = vsel %vm595_vm2, %v2236_v15, %v617_v44 }
 0x14c   : > { %v661_v52 = vmul.f32 %v2335_v48, %v2335_v48  ;;  %v685_v53 = vadd.f32 %v2335_v48, %v2236_v15 }
 0x14d   : > { %v623_v45 = vpop.permute.xlu0 %622  ;;  %v756_v56 = vadd.f32 %v662_v39, %v658_v38 }
 0x14e   : > { %v2339_v49 = vsel %vm596_vm3, %v570_v12, %v623_v45  ;;  %v759_v62 = vadd.f32 %v665_v40, %v661_v52  ;;  %v629_v63 = vpop.permute.xlu1 %628  ;;  %v777_v12 = vrot.slane %v2344_v51, 1 }
 0x14f   : > { %v666_v57 = vmul.f32 %v2339_v49, %v2339_v49  ;;  %v686_v58 = vadd.f32 %v682_v47, %v2339_v49  ;;  %v2364_v7 = vsel %vm596_vm3, %v2236_v15, %v629_v63 }
 0x150   : > { %v669_v9 = vmul.f32 %v2364_v7, %v2364_v7  ;;  %v689_v10 = vadd.f32 %v685_v53, %v2364_v7 }
 0x151   : > { %v627_v0 = vpop.permute.xlu0 %626  ;;  %v690_v2 = vrot.slane %v686_v58, 7  ;;  %v703_v3 = vrot.slane %v686_v58, 1  ;;  %v760_v4 = vadd.f32 %v756_v56, %v666_v57 }
 0x152   : > { %v2373_v11 = vsel %vm596_vm3, %v2205_v5, %v627_v0  ;;  %v693_v18 = vrot.slane %v689_v10, 7  ;;  %v706_v21 = vrot.slane %v689_v10, 1  ;;  %v763_v22 = vadd.f32 %v759_v62, %v669_v9  ;;  %v637_v25 = vpop.permute.xlu1 %636 }
 0x153   : > { %v697_v13 = vsel %vm694_vm4, %v690_v2, %v691_v60  ;;  %v764_v14 = vrot.slane %v760_v4, 7  ;;  %v776_v15 = vrot.slane %v760_v4, 1  ;;  %v710_v17 = vsel %vm707_vm5, %v703_v3, %v704_v61 }
 0x154   : > { %v700_v26 = vadd.f32 %v697_v13, %v2325_v43  ;;  %v668_v29 = vmul.f32 %v2373_v11, %v2373_v11  ;;  %v688_v30 = vadd.f32 %v684_v55, %v2373_v11  ;;  %v698_v36 = vsel %vm694_vm4, %v693_v18, %v690_v2 }
 0x155   : > { %v770_v28 = vsel %vm694_vm4, %v764_v14, %v765_v8  ;;  %v782_v35 = vsel %vm707_vm5, %v776_v15, %v777_v12  ;;  %v767_v37 = vrot.slane %v763_v22, 7  ;;  %v635_v38 = vpop.permute.xlu0 %634  ;;  %v699_v39 = vadd.f32 %v698_v36, %v686_v58 }
 0x156   : > { %v773_v31 = vadd.f32 %v770_v28, %v2344_v51  ;;  %v779_v40 = vrot.slane %v763_v22, 1  ;;  %v692_v41 = vrot.slane %v688_v30, 7  ;;  %v705_v42 = vrot.slane %v688_v30, 1  ;;  %v641_v62 = vpop.permute.xlu1 %640 }
 0x157   : > { %v711_v43 = vsel %vm707_vm5, %v706_v21, %v703_v3  ;;  %v771_v44 = vsel %vm694_vm4, %v767_v37, %v764_v14  ;;  %v762_v45 = vadd.f32 %v758_v59, %v668_v29  ;;  %v643_v47 = vsel %vm595_vm2, %v2240_v16, %v637_v25 }
 0x158   : > { %v712_v51 = vadd.f32 %v710_v17, %v699_v39  ;;  %v772_v52 = vadd.f32 %v771_v44, %v760_v4  ;;  %v695_v53 = vsel %vm694_vm4, %v692_v41, %v693_v18  ;;  %v642_v55 = vsel %vm595_vm2, %v2258_v20, %v635_v38 }
 0x159   : > { %v783_v56 = vsel %vm707_vm5, %v779_v40, %v776_v15  ;;  %v696_v57 = vsel %vm694_vm4, %v691_v60, %v692_v41  ;;  %v702_v58 = vadd.f32 %v695_v53, %v689_v10  ;;  %v709_v59 = vsel %vm707_vm5, %v704_v61, %v705_v42  ;;  %v639_v61 = vpop.permute.xlu0 %638 }
 0x15a   : > { %v2409_v63 = vmul.f32 0.11111111, %v712_v51  ;;  %v784_v0 = vadd.f32 %v782_v35, %v772_v52  ;;  %v701_v2 = vadd.f32 %v696_v57, %v688_v30  ;;  %v713_v3 = vadd.f32 %v709_v59, %v700_v26 }
 0x15b   : > { %v708_v4 = vsel %vm707_vm5, %v705_v42, %v706_v21  ;;  %v715_v9 = vadd.f32 %v711_v43, %v702_v58  ;;  %v766_v13 = vrot.slane %v762_v45, 7  ;;  %v778_v14 = vrot.slane %v762_v45, 1 }
 0x15c   : > { %v788_v15 = vmul.f32 0.11111111, %v784_v0  ;;  %v828_v60 = vmul.f32 %v2409_v63, %v2409_v63  ;;  %v714_v10 = vadd.f32 %v708_v4, %v701_v2  ;;  %v2415_v17 = vmul.f32 0.11111111, %v713_v3 }
 0x15d   : > { %v2417_v18 = vmul.f32 0.11111111, %v715_v9  ;;  %v768_v25 = vsel %vm694_vm4, %v766_v13, %v767_v37  ;;  %v769_v26 = vsel %vm694_vm4, %v765_v8, %v766_v13  ;;  %v671_v21 = vmul.f32 %v643_v47, %v2289_v27  ;;  %v649_v8 = vpop.permute.xlu1 %648  ;;  %v647_v57 = vpop.permute.xlu0 %646 }
 0x15e   : > { %v832_v28 = vsub.f32 %v788_v15, %v828_v60  ;;  %v2424_v29 = vmul.f32 0.11111111, %v714_v10  ;;  %v774_v30 = vadd.f32 %v769_v26, %v762_v45  ;;  %v775_v35 = vadd.f32 %v768_v25, %v763_v22 }
 0x15f   : > { %v780_v36 = vsel %vm707_vm5, %v778_v14, %v779_v40  ;;  %v781_v38 = vsel %vm707_vm5, %v777_v12, %v778_v14  ;;  %v829_v39 = vmul.f32 %v2415_v17, %v2415_v17  ;;  %v831_v37 = vmul.f32 %v2417_v18, %v2417_v18 }
 0x160   : > { %v2434_v41 = vadd.f32 0.01, %v832_v28  ;;  %v785_v27 = vadd.f32 %v781_v38, %v773_v31  ;;  %v786_v42 = vadd.f32 %v780_v36, %v774_v30  ;;  %v787_v43 = vadd.f32 %v783_v56, %v775_v35 }
 0x161   : > { %v830_v22 = vmul.f32 %v2424_v29, %v2424_v29  ;;  %v721_v40 = vadd.f32 %v643_v47, %v2240_v16  ;;  %v670_v44 = vmul.f32 %v642_v55, %v2308_v34  ;;  %v676_v12 = vmul.f32 %v2250_v19, %v2205_v5  ;;  %v653_v3 = vpop.permute.xlu1 %652  ;;  %v651_v10 = vpop.permute.xlu0 %650 }
 0x162   : > { %v789_v45 = vmul.f32 0.11111111, %v785_v27  ;;  %v790_v51 = vmul.f32 0.11111111, %v786_v42  ;;  %v791_v52 = vmul.f32 0.11111111, %v787_v43  ;;  %v793_v53 = vadd.f32 %v2329_v46, %v671_v21 }
 0x163   : > { %v720_v31 = vadd.f32 %v642_v55, %v2258_v20  ;;  %v645_v56 = vsel %vm595_vm2, %v2269_v23, %v641_v62  ;;  %v644_v47 = vsel %vm595_vm2, %v2250_v19, %v639_v61  ;;  %v655_v34 = vsel %vm596_vm3, %v2240_v16, %v649_v8 }
 0x164   : > { %1439 = vrcp.f32 %v2434_v41  ;;  %v833_v58 = vsub.f32 %v789_v45, %v829_v39  ;;  %v834_v59 = vsub.f32 %v790_v51, %v830_v22  ;;  %v835_v46 = vsub.f32 %v791_v52, %v831_v37 }
 0x165   : > { %v792_v0 = vadd.f32 %v2342_v50, %v670_v44  ;;  %v673_v55 = vmul.f32 %v645_v56, %v2335_v48  ;;  %v672_v2 = vmul.f32 %v644_v47, %v2299_v32  ;;  %v679_v62 = vmul.f32 %v655_v34, %v2304_v33 }
 0x166   : > { %v2458_v4 = vadd.f32 0.01, %v833_v58  ;;  %v2460_v9 = vadd.f32 0.01, %v834_v59  ;;  %v2462_v13 = vadd.f32 0.01, %v835_v46  ;;  %v723_v16 = vadd.f32 %v645_v56, %v2269_v23 }
 0x167   : > { %v722_v14 = vadd.f32 %v644_v47, %v2250_v19  ;;  %v725_v15 = vadd.f32 %v721_v40, %v655_v34  ;;  %v2466_v60 = vadd.f32 %v793_v53, %v679_v62  ;;  %v654_v32 = vsel %vm596_vm3, %v2258_v20, %v647_v57 }
 0x168   : > { %1441 = vrcp.f32 %v2458_v4  ;;  %v678_v33 = vmul.f32 %v654_v32, %v2339_v49  ;;  %v724_v48 = vadd.f32 %v720_v31, %v654_v32  ;;  %v657_v50 = vsel %vm596_vm3, %v2269_v23, %v653_v3 }
 0x169   : > { %1443 = vrcp.f32 %v2460_v9  ;;  %v795_v61 = vadd.f32 %v2352_v54, %v673_v55  ;;  %v794_v25 = vadd.f32 %v676_v12, %v672_v2  ;;  %v729_v26 = vrot.slane %v725_v15, 7 }
 0x16a   : > { %1445 = vrcp.f32 %v2462_v13  ;;  %v741_v21 = vrot.slane %v725_v15, 1  ;;  %v801_v20 = vrot.slane %v2466_v60, 7  ;;  %v728_v28 = vrot.slane %v724_v48, 7 }
 0x16b   : > { %v796_v30 = vadd.f32 %v792_v0, %v678_v33  ;;  %v681_v49 = vmul.f32 %v657_v50, %v2364_v7  ;;  %v727_v35 = vadd.f32 %v723_v16, %v657_v50  ;;  %v656_v23 = vsel %vm596_vm3, %v2250_v19, %v651_v10 }
 0x16c   : > { %v813_v36 = vrot.slane %v2466_v60, 1  ;;  %v740_v38 = vrot.slane %v724_v48, 1  ;;  %v680_v54 = vmul.f32 %v656_v23, %v2373_v11  ;;  %v726_v39 = vadd.f32 %v722_v14, %v656_v23 }
 0x16d   : > { %v734_v37 = vsel %vm694_vm4, %v728_v28, %v729_v26  ;;  %v800_v8 = vrot.slane %v796_v30, 7  ;;  %v812_v27 = vrot.slane %v796_v30, 1  ;;  %v731_v42 = vrot.slane %v727_v35, 7 }
 0x16e   : > { %v743_v43 = vrot.slane %v727_v35, 1  ;;  %v799_v22 = vadd.f32 %v795_v61, %v681_v49  ;;  %v730_v7 = vrot.slane %v726_v39, 7  ;;  %v742_v44 = vrot.slane %v726_v39, 1 }
 0x16f   : > { %v735_v40 = vsel %vm694_vm4, %v731_v42, %v728_v28  ;;  %v798_v19 = vadd.f32 %v794_v25, %v680_v54  ;;  %v737_v12 = vadd.f32 %v734_v37, %v725_v15  ;;  %v746_v45 = vsel %vm707_vm5, %v740_v38, %v741_v21 }
 0x170   : > { %v803_v11 = vrot.slane %v799_v22, 7  ;;  %v806_v52 = vsel %vm694_vm4, %v800_v8, %v801_v20  ;;  %v818_v53 = vsel %vm707_vm5, %v812_v27, %v813_v36  ;;  %v732_v57 = vsel %vm694_vm4, %v730_v7, %v731_v42 }
 0x171   : > { %v2492_v51 = vpop.eup %1439  ;;  %v733_v31 = vsel %vm694_vm4, %v729_v26, %v730_v7  ;;  %v736_v56 = vadd.f32 %v735_v40, %v724_v48  ;;  %v747_v47 = vsel %vm707_vm5, %v743_v43, %v740_v38  ;;  %v739_v58 = vadd.f32 %v732_v57, %v727_v35 }
 0x172   : > { %v738_v34 = vadd.f32 %v733_v31, %v726_v39  ;;  %v815_v59 = vrot.slane %v799_v22, 1  ;;  %v744_v46 = vsel %vm707_vm5, %v742_v44, %v743_v43  ;;  %v745_v0 = vsel %vm707_vm5, %v741_v21, %v742_v44 }
 0x173   : > { %v802_v55 = vrot.slane %v798_v19, 7  ;;  %v807_v2 = vsel %vm694_vm4, %v803_v11, %v800_v8  ;;  %v749_v62 = vadd.f32 %v745_v0, %v737_v12  ;;  %v751_v16 = vadd.f32 %v747_v47, %v739_v58 }
 0x174   : > { %v750_v3 = vadd.f32 %v744_v46, %v738_v34  ;;  %v809_v15 = vadd.f32 %v806_v52, %v2466_v60  ;;  %v814_v48 = vrot.slane %v798_v19, 1  ;;  %v748_v61 = vadd.f32 %v746_v45, %v736_v56 }
 0x175   : > { %v1442_v14 = vpop.eup %1441  ;;  %v804_v32 = vsel %vm694_vm4, %v802_v55, %v803_v11  ;;  %v805_v33 = vsel %vm694_vm4, %v801_v20, %v802_v55  ;;  %v753_v25 = vmul.f32 0.11111111, %v749_v62  ;;  %v808_v49 = vadd.f32 %v807_v2, %v796_v30 }
 0x176   : > { %v1444_v50 = vpop.eup %1443  ;;  %v853_v10 = vmul.f32 %v1442_v14, %v2458_v4  ;;  %v754_v26 = vmul.f32 0.11111111, %v750_v3  ;;  %v819_v60 = vsel %vm707_vm5, %v815_v59, %v812_v27  ;;  %v810_v35 = vadd.f32 %v805_v33, %v798_v19 }
 0x177   : > { %v1446_v21 = vpop.eup %1445  ;;  %v854_v28 = vmul.f32 %v1444_v50, %v2460_v9  ;;  %v755_v23 = vmul.f32 0.11111111, %v751_v16  ;;  %v811_v38 = vadd.f32 %v804_v32, %v799_v22  ;;  %v816_v20 = vsel %vm707_vm5, %v814_v48, %v815_v59 }
 0x178   : > { %v817_v54 = vsel %vm707_vm5, %v813_v36, %v814_v48  ;;  %v822_v37 = vadd.f32 %v816_v20, %v810_v35  ;;  %v837_v8 = vmul.f32 %v753_v25, %v2415_v17  ;;  %v752_v42 = vmul.f32 0.11111111, %v748_v61 }
 0x179   : > { %v858_v4 = vsub.f32 2.0, %v854_v28  ;;  %v821_v39 = vadd.f32 %v817_v54, %v809_v15  ;;  %v823_v9 = vadd.f32 %v819_v60, %v811_v38  ;;  %v838_v30 = vmul.f32 %v754_v26, %v2424_v29 }
 0x17a   : > { %v857_v43 = vsub.f32 2.0, %v853_v10  ;;  %v826_v40 = vmul.f32 0.11111111, %v822_v37  ;;  %v855_v22 = vmul.f32 %v1446_v21, %v2462_v13  ;;  %v820_v44 = vadd.f32 %v818_v53, %v808_v49 }
 0x17b   : > { %v862_v27 = vmul.f32 %v1444_v50, %v858_v4  ;;  %v825_v7 = vmul.f32 0.11111111, %v821_v39  ;;  %v839_v19 = vmul.f32 %v755_v23, %v2417_v18  ;;  %v852_v36 = vmul.f32 %v2492_v51, %v2434_v41 }
 0x17c   : > { %v861_v12 = vmul.f32 %v1442_v14, %v857_v43  ;;  %v827_v45 = vmul.f32 0.11111111, %v823_v9  ;;  %v842_v52 = vsub.f32 %v826_v40, %v838_v30  ;;  %v859_v57 = vsub.f32 2.0, %v855_v22 }
 0x17d   : > { %v841_v11 = vsub.f32 %v825_v7, %v837_v8  ;;  %v856_v34 = vsub.f32 2.0, %v852_v36  ;;  %v824_v58 = vmul.f32 0.11111111, %v820_v44  ;;  %v836_v59 = vmul.f32 %v752_v42, %v2409_v63 }
 0x17e   : > { %v866_v31 = vmul.f32 %v862_v27, %v842_v52  ;;  %v863_v47 = vmul.f32 %v1446_v21, %v859_v57  ;;  %v843_v46 = vsub.f32 %v827_v45, %v839_v19  ;;  %v603_v60 = vstv %s1263_s20 }
 0x17f   : > { %v865_v56 = vmul.f32 %v861_v12, %v841_v11  ;;  %v860_v53 = vmul.f32 %v2492_v51, %v856_v34  ;;  %v840_v41 = vsub.f32 %v824_v58, %v836_v59  ;;  %v600_v37 = vadd.s32 16, %v2199_v1 }
 0x180   : > { %880 = vrot.lane.b32.xlu0 %v866_v31, %s1789_s2  ;;  %v867_v13 = vmul.f32 %v863_v47, %v843_v46  ;;  %v870_v0 = vmul.f32 %v866_v31, %v2424_v29 }
 0x181   : > { %878 = vrot.lane.b32.xlu1 %v865_v56, %s1789_s2  ;;  %v864_v55 = vmul.f32 %v860_v53, %v840_v41  ;;  %v869_v29 = vmul.f32 %v865_v56, %v2415_v17  ;;  %v2591_v44 = vadd.s32 %v603_v60, %v600_v37 }
 0x182   : > { %v2538_v2 = vsub.f32 %v754_v26, %v870_v0  ;;  %v871_v3 = vmul.f32 %v867_v13, %v2417_v18  ;;  %v599_v26 = vadd.s32 8, %v2199_v1 }
 0x183   : > { %v868_v62 = vmul.f32 %v864_v55, %v2409_v63  ;;  %v2553_v63 = vsub.f32 %v753_v25, %v869_v29  ;;  %vm607_vm8 = vcmp.eq.s32.totalorder %v2591_v44, 0  ;;  %vm609_vm9 = vcmp.eq.s32.totalorder %v2591_v44, 63 }
 0x184   : > { %892 = vrot.lane.b32.xlu0 %v866_v31, %s1790_s9  ;;  %v2551_v16 = vsub.f32 %v755_v23, %v871_v3  ;;  %v2583_v39 = vadd.s32 %v603_v60, %v599_v26 }
 0x185   : > { %882 = vrot.lane.b32.xlu1 %v867_v13, %s1789_s2  ;;  %v2544_v51 = vsub.f32 %v752_v42, %v868_v62 }
 0x186   : > { %vm606_vm6 = vcmp.eq.s32.totalorder %v2583_v39, 0  ;;  %vm608_vm7 = vcmp.eq.s32.totalorder %v2583_v39, 63 }
 0x188   : > { %876 = vrot.lane.b32.xlu0 %v864_v55, %s1789_s2 }
 0x189   : > { %890 = vrot.lane.b32.xlu1 %v865_v56, %s1790_s9 }
 0x18c   : > { %888 = vrot.lane.b32.xlu0 %v864_v55, %s1790_s9 }
 0x18d   : > { %904 = vrot.lane.b32.xlu1 %v2538_v2, %s1789_s2 }
 0x190   : > { %894 = vrot.lane.b32.xlu0 %v867_v13, %s1790_s9 }
 0x191   : > { %900 = vrot.lane.b32.xlu1 %v2544_v51, %s1789_s2 }
 0x194   : > { %902 = vrot.lane.b32.xlu0 %v2553_v63, %s1789_s2 }
 0x195   : > { %906 = vrot.lane.b32.xlu1 %v2551_v16, %s1789_s2 }
 0x198   : > { %912 = vrot.lane.b32.xlu0 %v2544_v51, %s1790_s9 }
 0x199   : > { %914 = vrot.lane.b32.xlu1 %v2553_v63, %s1790_s9 }
 0x19c   : > { %916 = vrot.lane.b32.xlu0 %v2538_v2, %s1790_s9 }
 0x19d   : > { %918 = vrot.lane.b32.xlu1 %v2551_v16, %s1790_s9 }
 0x1f2   : > { %v881_v18 = vpop.permute.xlu0 %880 }
 0x1f3   : > { %v879_v17 = vpop.permute.xlu1 %878  ;;  %v886_v25 = vsel %vm595_vm2, %v866_v31, %v881_v18 }
 0x1f4   : > { %v885_v32 = vsel %vm595_vm2, %v865_v56, %v879_v17  ;;  %v926_v54 = vadd.f32 %v886_v25, %v866_v31 }
 0x1f5   : > { %v925_v61 = vadd.f32 %v885_v32, %v865_v56 }
 0x1f6   : > { %v893_v15 = vpop.permute.xlu0 %892 }
 0x1f7   : > { %v883_v14 = vpop.permute.xlu1 %882  ;;  %v898_v38 = vsel %vm596_vm3, %v866_v31, %v893_v15 }
 0x1f8   : > { %v887_v23 = vsel %vm595_vm2, %v867_v13, %v883_v14  ;;  %v930_v42 = vadd.f32 %v926_v54, %v898_v38 }
 0x1f9   : > { %v927_v8 = vadd.f32 %v887_v23, %v867_v13 }
 0x1fa   : > { %v877_v48 = vpop.permute.xlu0 %876  ;;  %v934_v19 = vrot.slane %v930_v42, 7 }
 0x1fb   : > { %v891_v33 = vpop.permute.xlu1 %890  ;;  %v884_v10 = vsel %vm595_vm2, %v864_v55, %v877_v48 }
 0x1fc   : > { %v897_v50 = vsel %vm596_vm3, %v865_v56, %v891_v33  ;;  %v924_v28 = vadd.f32 %v884_v10, %v864_v55  ;;  %v942_v56 = vrot.slane %v930_v42, 1 }
 0x1fd   : > { %v929_v21 = vadd.f32 %v925_v61, %v897_v50 }
 0x1fe   : > { %v889_v35 = vpop.permute.xlu0 %888 }
 0x1ff   : > { %v905_v49 = vpop.permute.xlu1 %904  ;;  %v896_v20 = vsel %vm596_vm3, %v864_v55, %v889_v35  ;;  %v933_v30 = vrot.slane %v929_v21, 7  ;;  %v941_v12 = vrot.slane %v929_v21, 1 }
 0x200   : > { %v928_v4 = vadd.f32 %v924_v28, %v896_v20  ;;  %v910_v58 = vsel %vm595_vm2, %v2538_v2, %v905_v49 }
 0x201   : > { %v935_v34 = vsel %vm694_vm4, %v933_v30, %v934_v19  ;;  %v954_v14 = vadd.f32 %v910_v58, %v2538_v2 }
 0x202   : > { %v932_v9 = vrot.slane %v928_v4, 7  ;;  %v895_v27 = vpop.permute.xlu0 %894  ;;  %v938_v29 = vsel %vm607_vm8, %v930_v42, %v935_v34 }
 0x203   : > { %v901_v43 = vpop.permute.xlu1 %900  ;;  %v899_v7 = vsel %vm596_vm3, %v867_v13, %v895_v27  ;;  %v945_v13 = vsel %vm707_vm5, %v941_v12, %v942_v56  ;;  %v940_v10 = vadd.f32 %v938_v29, %v930_v42 }
 0x204   : > { %v936_v40 = vsel %vm694_vm4, %v932_v9, %v933_v30  ;;  %v931_v22 = vadd.f32 %v927_v8, %v899_v7  ;;  %v908_v52 = vsel %vm595_vm2, %v2544_v51, %v901_v43  ;;  %v946_v15 = vsel %vm608_vm7, %v929_v21, %v945_v13 }
 0x205   : > { %v937_v11 = vsel %vm606_vm6, %v929_v21, %v936_v40  ;;  %v952_v46 = vadd.f32 %v908_v52, %v2544_v51 }
 0x206   : > { %v903_v45 = vpop.permute.xlu0 %902  ;;  %v943_v57 = vrot.slane %v931_v22, 1  ;;  %v939_v59 = vadd.f32 %v937_v11, %v929_v21 }
 0x207   : > { %v907_v36 = vpop.permute.xlu1 %906  ;;  %v909_v31 = vsel %vm595_vm2, %v2553_v63, %v903_v45 }
 0x208   : > { %v953_v47 = vadd.f32 %v909_v31, %v2553_v63  ;;  %v944_v0 = vsel %vm707_vm5, %v942_v56, %v943_v57  ;;  %v911_v55 = vsel %vm595_vm2, %v2551_v16, %v907_v36  ;;  %v948_v61 = vadd.f32 %v946_v15, %v939_v59 }
 0x209   : > { %v947_v32 = vsel %vm609_vm9, %v930_v42, %v944_v0  ;;  %v955_v33 = vadd.f32 %v911_v55, %v2551_v16 }
 0x20a   : > { %v913_v41 = vpop.permute.xlu0 %912  ;;  %v949_v60 = vadd.f32 %v947_v32, %v940_v10  ;;  %v950_v4 = vmul.f32 0.11111111, %v948_v61 }
 0x20b   : > { %v915_v53 = vpop.permute.xlu1 %914  ;;  %v920_v3 = vsel %vm596_vm3, %v2544_v51, %v913_v41 }
 0x20c   : > { %v921_v62 = vsel %vm596_vm3, %v2553_v63, %v915_v53  ;;  %v956_v18 = vadd.f32 %v952_v46, %v920_v3  ;;  %v951_v9 = vmul.f32 0.11111111, %v949_v60  ;;  %v980_v1 = vmul.f32 %v950_v4, %v2209_v6 }
 0x20d   : > { %v957_v17 = vadd.f32 %v953_v47, %v921_v62 }
 0x20e   : > { %v960_v48 = vrot.slane %v956_v18, 7  ;;  %v917_v51 = vpop.permute.xlu0 %916  ;;  %v981_v22 = vmul.f32 %v951_v9, %v2205_v5 }
 0x20f   : > { %v961_v63 = vrot.slane %v957_v17, 7  ;;  %v919_v50 = vpop.permute.xlu1 %918  ;;  %v922_v26 = vsel %vm596_vm3, %v2538_v2, %v917_v51  ;;  %v969_v23 = vrot.slane %v957_v17, 1 }
 0x210   : > { %v923_v25 = vsel %vm596_vm3, %v2551_v16, %v919_v50  ;;  %v958_v49 = vadd.f32 %v954_v14, %v922_v26 }
 0x211   : > { %v964_v21 = vsel %vm694_vm4, %v960_v48, %v961_v63  ;;  %v959_v28 = vadd.f32 %v955_v33, %v923_v25 }
 0x212   : > { %v965_v35 = vsel %vm606_vm6, %v957_v17, %v964_v21  ;;  %v962_v20 = vrot.slane %v958_v49, 7  ;;  %v970_v54 = vrot.slane %v958_v49, 1 }
 0x213   : > { %v971_v38 = vrot.slane %v959_v28, 1  ;;  %v967_v16 = vadd.f32 %v965_v35, %v957_v17 }
 0x214   : > { %v963_v24 = vsel %vm694_vm4, %v961_v63, %v962_v20  ;;  %v973_v37 = vsel %vm707_vm5, %v969_v23, %v970_v54 }
 0x215   : > { %v972_v2 = vsel %vm707_vm5, %v970_v54, %v971_v38  ;;  %v966_v8 = vsel %vm607_vm8, %v958_v49, %v963_v24  ;;  %v974_v42 = vsel %vm608_vm7, %v957_v17, %v973_v37 }
 0x216   : > { %v968_v30 = vadd.f32 %v966_v8, %v958_v49  ;;  %v976_v43 = vadd.f32 %v974_v42, %v967_v16  ;;  %v975_v27 = vsel %vm609_vm9, %v958_v49, %v972_v2 }
 0x218   : > { %v977_v7 = vadd.f32 %v975_v27, %v968_v30  ;;  %v978_v40 = vmul.f32 0.11111111, %v976_v43 }
 0x21a   : > { %v979_v39 = vmul.f32 0.11111111, %v977_v7  ;;  %v982_v19 = vadd.f32 %v980_v1, %v978_v40 }
 0x21c   : > { %v983_v44 = vadd.f32 %v981_v22, %v979_v39  ;;  %984 = vst [vmem:[%s537_s26] sm:$0xff] %v982_v19 }
 0x21e   : > { %985 = vst [vmem:[%s537_s26 + $0x8] sm:$0xff] %v983_v44 }
 0x21f   : > { %1628 = shalt.err (!%p1625_p3)
}
 0x220   : > { %s1629_s28 = scalar_lea.hbm %s2664_s11, 256  ;;  %s1633_s2 = scalar_lea.hbm %s2847_s1, 2048 }
 0x221   : > { %p1630_p7 = scmp.ne.s32.totalorder %s2664_s11, %s1629_s28  ;;  %p1634_p5 = scmp.lt.s32.totalorder %s2664_s11, %s2847_s1 }
 0x222   : > { %p1635_p4 = scmp.lt.s32.totalorder %s1633_s2, %s1629_s28 }
 0x223   : > { %p1631_p8 = pnand %p1630_p7, %p2848_p10 }
 0x224   : > { %p1636_p13 = por %p1635_p4, %p1634_p5 }
 0x225   : > { %p1632_p9 = pneg %p1631_p8 }
 0x227   : > { %p1637_p11 = pnand %p1636_p13, %p1632_p9 }
 0x229   : > { %1640 = shalt.err (!%p1637_p11)
}
 0x22a   : > { %s1792_s20 = smov 128   ;;  %s1793_s16 = smov 8  }
 0x22b   : > { %1294 = dma.vmem_to_hbm [thread:$0]  (%p2848_p10), %s2659_s30, 256, %s2664_s11, %s987_s12, %s1792_s20, %s1792_s20, %s1793_s16  }
 0x22c PF: > { %s2849_s24 = sld [smem:[#allocation23_spill]]  ;;  %p1320_p6 = scmp.ge.s32.totalorder %s1779_s10, 2 }
 0x22d   : > { %s2850_s8 = sld [smem:[#allocation40_spill]] }
 0x232   : > { %s1017_s7 = sand.u32 1, %s2849_s24  }
 0x233   : > { %p2851_p12 = scmp.ne.s32.totalorder %s2850_s8, 0  ;;  %s1018_s26 = scalar_lea.sflag [#allocation4], %s1017_s7 }
 0x235   : > { %p1316_p1 = pnand %p1320_p6, %p2851_p12 }
 0x237   : > { %p1317_p2 = pneg %p1316_p1 }
 0x239   : > { %1722 = dma.done.wait (%p1317_p2), %s1018_s26, 256  }
 0x23a   : > { %1724 = vsyncadd (%p1317_p2), %s1018_s26, 4294967040  ;;  %s31_s10 = sadd.s32 1, %s1779_s10   ;;  %s2853_s24 = sld [smem:[#allocation21_spill]] }
 0x23b   : > { %p2694_p0 = scmp.ge.s32.totalorder %s31_s10, 10   ;;  %s2854_s25 = sld [smem:[#allocation22_spill]] }
 0x23c   : > { %s2855_s26 = sld [smem:[#allocation33_spill]]  ;;  %s2862_s21 = smov %s1731_s22 }
 0x23d   : > { %s2856_s27 = sld [smem:[#allocation24_spill]]  ;;  %s2863_s22 = smov %s1735_s23 }
 0x23e   : > { %s2857_s14 = sld [smem:[#allocation37_spill]]  ;;  %s2864_s23 = smov %s2098_s6 }
 0x23f   : > { %s2858_s30 = sld [smem:[#allocation27_spill]]  ;;  %s2865_s28 = smov %s1759_s29 }
 0x240   : > { %s2859_s7 = sld [smem:[#allocation28_spill]]  ;;  %30 = sbr.rel (!%p2694_p0) target bundleno = 23 (0x17), region = 150 }
 0x241   : > { %s2860_s8 = sld [smem:[#allocation29_spill]] }
 0x242   : > { %s2861_s9 = sld [smem:[#allocation30_spill]] }
 0x244   : > { %s2866_s29 = smov %s2857_s14 }
 0x245   :  { %1023 = vsyncpa [#allocation3], 1 }
 0x246   :  { %1025 = vsyncpa [#allocation3 + $0x1], 1 }
 0x247   :  { %1026 = vsyncpa [#allocation6], 1 }
 0x248   :  { %1028 = vsyncpa [#allocation6 + $0x1], 1 }
 0x249   :  { %1029 = vsyncpa [#allocation9], 1 }
 0x24a   :  { %1031 = vsyncpa [#allocation9 + $0x1], 1 }
 0x24b   :  { %1032 = vsyncpa [#allocation12], 1 }
 0x24c   :  { %1034 = vsyncpa [#allocation12 + $0x1], 1 }
 0x24d   :  { %1035 = vsyncpa [#allocation4], 1 }
 0x24e   :  { %1037 = vsyncpa [#allocation4 + $0x1], 1 }

</bundles_post_ra>
